<compile_context>
chip_gen: v7x
topology: tpu7x:2x2x1
jax: 0.10.0
libtpu: 0.0.40
codegen_flags: <defaults>
</compile_context>

<pallas_src>
import functools

import jax
import jax.numpy as jnp
from jax import lax
from jax.experimental import pallas as pl
from jax.experimental.pallas import tpu as pltpu

EPS = 1e-5
SENTINEL = 1e30   # per-channel pad value that relu(a*x+b) maps to exactly 0
MAX_TK = 2048     # single-K-step GEMM whenever Kp <= MAX_TK


def _round_up(x, m):
    return (x + m - 1) // m * m


# ----------------------------- Pallas kernels ------------------------------

def _gemm_kernel(*refs, nk, preact, m_valid, tm):
    """(tm,tk)@(tk,tn) MXU tile, optional fused per-K-column affine+ReLU on the
    A operand (bn1), bf16 output, fused per-channel sum / sumsq (BN stats)."""
    if preact:
        a_ref, pa_ref, pb_ref, b_ref, o_ref, st_ref = refs[:6]
        rest = refs[6:]
    else:
        a_ref, b_ref, o_ref, st_ref = refs[:4]
        rest = refs[4:]
    acc_ref = rest[0] if nk > 1 else None

    a = a_ref[...]
    if preact:
        # h = relu(bn1(out1)) applied per K column right before feeding the MXU.
        a = jnp.maximum(a.astype(jnp.float32) * pa_ref[...] + pb_ref[...], 0.0)
        a = a.astype(jnp.bfloat16)
    part = jnp.dot(a, b_ref[...], preferred_element_type=jnp.float32)

    if nk > 1:  # K-loop fallback for very large K (unused at these shapes)
        @pl.when(pl.program_id(2) == 0)
        def _():
            acc_ref[...] = jnp.zeros_like(acc_ref)
        acc_ref[...] += part

    def _epilogue():
        acc = acc_ref[...] if nk > 1 else part
        o_ref[...] = acc.astype(o_ref.dtype)
        st = acc
        if m_valid is not None:  # exclude padded rows from the batch statistics
            rows = (lax.broadcasted_iota(jnp.int32, acc.shape, 0)
                    + pl.program_id(0) * tm)
            st = jnp.where(rows < m_valid, acc, 0.0)
        s = jnp.sum(st, axis=0, keepdims=True)           # (1, tn)
        q = jnp.sum(st * st, axis=0, keepdims=True)      # (1, tn)
        # One full (8, tn) store: sum in sublane 0, sumsq in sublane 1.
        rid = lax.broadcasted_iota(jnp.int32, (8, s.shape[1]), 0)
        st_ref[...] = jnp.where(rid == 0, s, jnp.where(rid == 1, q, 0.0))[None]

    if nk > 1:
        pl.when(pl.program_id(2) == nk - 1)(_epilogue)
    else:
        _epilogue()


def _residual_kernel(x_ref, i_ref, a2_ref, ad_ref, c_ref, o_ref):
    # relu(out2 * a2 + identity * ad + c),  c = b2 + bd.   bf16 I/O, f32 math.
    v = (x_ref[...].astype(jnp.float32) * a2_ref[...]
         + i_ref[...].astype(jnp.float32) * ad_ref[...] + c_ref[...])
    o_ref[...] = jnp.maximum(v, 0.0).astype(o_ref.dtype)


# --------------------------- Pallas call wrappers ---------------------------

def conv_gemm(patches, w_mat, pre_a=None, pre_b=None):
    """(M,K) bf16 patches @ (K,N) weights -> (out bf16 (Mp,N), col_sum, col_sumsq).

    If pre_a / pre_b (length-K f32 vectors) are given, the A operand is mapped
    through relu(pre_a * A + pre_b) per K column inside the kernel (fused bn1).
    """
    M, K = patches.shape
    K2, N = w_mat.shape
    assert K == K2

    # K tiling: pad to 128, single K step whenever it fits (kt == 1 here).
    Kp = _round_up(K, 128)
    nk = (Kp + MAX_TK - 1) // MAX_TK
    tk = _round_up((Kp + nk - 1) // nk, 128)
    Kp = tk * nk

    # N tiling: no padding; 256-wide tiles when N allows (v6e/v7x 256-wide MXU).
    if N % 128 == 0:
        tn = 256 if N % 256 == 0 else 128
    else:
        tn = N                      # full-dim block (e.g. N == 64)
    nt = N // tn

    # M tiling: >= 2 row tiles whenever possible so v7x's second TC has work.
    if M >= 512:
        tm = 256
    elif M >= 16:
        tm = _round_up(M, 16) // 2
    else:
        tm = _round_up(M, 8)
    Mp = _round_up(M, tm)
    mt = Mp // tm

    a = jnp.pad(patches, ((0, Mp - M), (0, Kp - K)))          # bf16 already
    b = jnp.pad(w_mat.astype(jnp.bfloat16), ((0, Kp - K), (0, 0)))

    preact = pre_a is not None
    operands = [a]
    in_specs = [pl.BlockSpec((tm, tk), lambda i, j, k: (i, k))]
    if preact:
        pa = jnp.pad(pre_a.astype(jnp.float32), (0, Kp - K)).reshape(1, Kp)
        pb = jnp.pad(pre_b.astype(jnp.float32), (0, Kp - K)).reshape(1, Kp)
        operands += [pa, pb]
        in_specs += [pl.BlockSpec((1, tk), lambda i, j, k: (0, k))] * 2
    operands.append(b)
    in_specs.append(pl.BlockSpec((tk, tn), lambda i, j, k: (k, j)))

    kernel = functools.partial(_gemm_kernel, nk=nk, preact=preact,
                               m_valid=(M if Mp != M else None), tm=tm)
    out, stats = pl.pallas_call(
        kernel,
        out_shape=(jax.ShapeDtypeStruct((Mp, N), jnp.bfloat16),
                   jax.ShapeDtypeStruct((mt, 8, N), jnp.float32)),
        grid=(mt, nt, nk),
        in_specs=in_specs,
        out_specs=(pl.BlockSpec((tm, tn), lambda i, j, k: (i, j)),
                   pl.BlockSpec((1, 8, tn), lambda i, j, k: (i, 0, j))),
        scratch_shapes=([pltpu.VMEM((tm, tn), jnp.float32)] if nk > 1 else []),
        compiler_params=pltpu.CompilerParams(
            dimension_semantics=("parallel", "parallel", "arbitrary")),
    )(*operands)

    col_sum = jnp.sum(stats[:, 0, :], axis=0)
    col_sumsq = jnp.sum(stats[:, 1, :], axis=0)
    return out, col_sum, col_sumsq


def _im2col(x, kh, kw, stride, padding, pad_value=None):
    """NHWC (bf16) -> im2col patches (B*Ho*Wo, kh*kw*C), tap-major/channel-minor.

    pad_value (per-channel) replaces the zero spatial padding; used to carry
    the bn1 sentinel so the fused affine+ReLU maps padded taps to exactly 0.
    """
    B, H, W, C = x.shape
    Ho = (H + 2 * padding - kh) // stride + 1
    Wo = (W + 2 * padding - kw) // stride + 1
    if padding > 0:
        xp = jnp.pad(x, ((0, 0), (padding, padding), (padding, padding), (0, 0)))
        if pad_value is not None:
            interior = jnp.pad(
                jnp.ones((1, H, W, 1), jnp.bool_),
                ((0, 0), (padding, padding), (padding, padding), (0, 0)))
            xp = jnp.where(interior, xp, pad_value.astype(x.dtype))
    else:
        xp = x
    if kh == 1 and kw == 1:
        return xp[:, ::stride, ::stride, :].reshape(B * Ho * Wo, C), Ho, Wo
    views = [xp[:, dy:dy + stride * Ho:stride, dx:dx + stride * Wo:stride, :]
             for dy in range(kh) for dx in range(kw)]
    patches = jnp.stack(views, axis=3).reshape(B * Ho * Wo, kh * kw * C)
    return patches, Ho, Wo


def fused_bn_add_relu(out2, identity, a2, ad, c):
    """relu(out2*a2 + identity*ad + c) per channel. (M,C) bf16 in -> (M,C) bf16."""
    M, C = out2.shape
    f = 128 // C if (C < 128 and 128 % C == 0) else 1   # lane-dense folding
    Cf = C * f
    R = _round_up(M, f) // f
    if R >= 1024:
        t = 512
    elif R >= 16:
        t = _round_up(R, 16) // 2          # >= 2 parallel steps for v7x
    else:
        t = _round_up(R, 8)
    Rp = _round_up(R, t)
    Mp = Rp * f

    def fold(v):
        return jnp.pad(v, ((0, Mp - M), (0, 0))).reshape(Rp, Cf)

    params = [jnp.tile(p.astype(jnp.float32), f)[None] for p in (a2, ad, c)]
    out = pl.pallas_call(
        _residual_kernel,
        out_shape=jax.ShapeDtypeStruct((Rp, Cf), jnp.bfloat16),
        grid=(Rp // t,),
        in_specs=[pl.BlockSpec((t, Cf), lambda i: (i, 0))] * 2
                 + [pl.BlockSpec((1, Cf), lambda i: (0, 0))] * 3,
        out_specs=pl.BlockSpec((t, Cf), lambda i: (i, 0)),
        compiler_params=pltpu.CompilerParams(dimension_semantics=("parallel",)),
    )(fold(out2), fold(identity), *params)
    return out.reshape(Mp, C)[:M]


# ------------------------------- BasicBlock ---------------------------------

def _bn_coeffs(s, q, count, gamma, beta):
    # Training-mode BatchNorm2d: biased batch statistics, eps=1e-5.
    # TODO(synk): E[x^2]-E[x]^2 can cancel for large activation means; switch
    # to a centered / Welford formulation if this ever feeds training.
    mean = s / count
    var = jnp.maximum(q / count - mean * mean, 0.0)
    a = gamma * lax.rsqrt(var + EPS)
    b = beta - mean * a
    return a, b


def basic_block_forward(params, x_nchw, stride):
    x = jnp.transpose(x_nchw, (0, 2, 3, 1)).astype(jnp.bfloat16)   # NCHW -> NHWC
    B, H, W, cin = x.shape
    w1 = params["conv1_w"]
    planes = w1.shape[-1]

    # conv1 (3x3, stride, pad 1) with fused BN1 batch statistics.
    p1, Ho, Wo = _im2col(x, 3, 3, stride, 1)
    out1, s1, q1 = conv_gemm(p1, w1.reshape(9 * cin, planes))
    M = B * Ho * Wo
    a1, b1 = _bn_coeffs(s1, q1, float(M), params["bn1_g"], params["bn1_b"])

    # conv2 (3x3, stride 1, pad 1) with bn1 affine+ReLU fused onto its A
    # operand.  conv2 zero-pads h = relu(bn1(out1)) spatially, so out1's
    # spatial padding carries a per-channel sentinel that relu(a1*x+b1) maps to
    # exactly 0 (sign-aware; only the measure-zero case a1 == 0 is approximate).
    padv = jnp.where(a1 > 0, -SENTINEL, jnp.where(a1 < 0, SENTINEL, 0.0))
    p2, _, _ = _im2col(out1[:M].reshape(B, Ho, Wo, planes), 3, 3, 1, 1,
                       pad_value=padv)
    out2, s2, q2 = conv_gemm(p2, params["conv2_w"].reshape(9 * planes, planes),
                             pre_a=jnp.tile(a1, 9), pre_b=jnp.tile(b1, 9))
    a2, b2 = _bn_coeffs(s2, q2, float(M), params["bn2_g"], params["bn2_b"])

    # Shortcut path.
    # TODO(synk): the 1x1 downsample could be embedded as the centre tap of a
    # zero 3x3 filter and concatenated with conv1 along N (one GEMM, N=2*planes,
    # shared A patches) to feed the 256-wide MXU on v6e/v7x.
    if "ds_w" in params:
        pd, _, _ = _im2col(x, 1, 1, stride, 0)
        idr, sd, qd = conv_gemm(pd, params["ds_w"].reshape(cin, planes))
        ad, bd = _bn_coeffs(sd, qd, float(M), params["ds_g"], params["ds_b"])
        ident = idr[:M]
    else:
        ident = x.reshape(M, cin)
        ad = jnp.ones((planes,), jnp.float32)
        bd = jnp.zeros((planes,), jnp.float32)

    y = fused_bn_add_relu(out2[:M], ident, a2, ad, b2 + bd)
    y = y.reshape(B, Ho, Wo, planes)
    return jnp.transpose(y, (0, 3, 1, 2)).astype(jnp.float32)      # NHWC -> NCHW


# --------------------------- pure-JAX reference ------------------------------

def _conv_ref(x, w, stride, padding):
    return lax.conv_general_dilated(
        x, w, (stride, stride), [(padding, padding)] * 2,
        dimension_numbers=("NHWC", "HWIO", "NHWC"))


def _bn_ref(x, g, b):
    mean = jnp.mean(x, axis=(0, 1, 2))
    var = jnp.var(x, axis=(0, 1, 2))
    return (x - mean) * (g / jnp.sqrt(var + EPS)) + b


def basic_block_ref(params, x_nchw, stride):
    x = jnp.transpose(x_nchw, (0, 2, 3, 1))
    out = jax.nn.relu(_bn_ref(_conv_ref(x, params["conv1_w"], stride, 1),
                              params["bn1_g"], params["bn1_b"]))
    out = _bn_ref(_conv_ref(out, params["conv2_w"], 1, 1),
                  params["bn2_g"], params["bn2_b"])
    if "ds_w" in params:
        ident = _bn_ref(_conv_ref(x, params["ds_w"], stride, 0),
                        params["ds_g"], params["ds_b"])
    else:
        ident = x
    return jnp.transpose(jax.nn.relu(out + ident), (0, 3, 1, 2))


# --------------------------------- params ------------------------------------

def init_block_params(key, inplanes, planes, stride):
    ks = jax.random.split(key, 6)

    def conv_w(k, kh, kw, cin, cout):
        # kaiming_normal_(mode='fan_out', nonlinearity='relu')
        std = (2.0 / (cout * kh * kw)) ** 0.5
        return std * jax.random.normal(k, (kh, kw, cin, cout), jnp.float32)

    def bn(k, c):
        g = 1.0 + 0.1 * jax.random.normal(k, (c,), jnp.float32)
        b = 0.1 * jax.random.normal(jax.random.fold_in(k, 1), (c,), jnp.float32)
        return g, b

    p = {"conv1_w": conv_w(ks[0], 3, 3, inplanes, planes),
         "conv2_w": conv_w(ks[1], 3, 3, planes, planes)}
    p["bn1_g"], p["bn1_b"] = bn(ks[2], planes)
    p["bn2_g"], p["bn2_b"] = bn(ks[3], planes)
    if stride != 1 or inplanes != planes:
        p["ds_w"] = conv_w(ks[4], 1, 1, inplanes, planes)
        p["ds_g"], p["ds_b"] = bn(ks[5], planes)
    return p


if __name__ == "__main__":
    key = jax.random.PRNGKey(0)
    kx, kp1, kp2 = jax.random.split(key, 3)
    x = jax.random.normal(kx, (2, 64, 16, 16), jnp.float32)      # NCHW

    # BasicBlock(64, 128, stride=2) with 1x1-conv downsample.
    p_ds = init_block_params(kp1, 64, 128, 2)
    fwd_ds = jax.jit(functools.partial(basic_block_forward, stride=2))
    y_ds = fwd_ds(p_ds, x)

    # BasicBlock(64, 64, stride=1), identity shortcut.
    p_id = init_block_params(kp2, 64, 64, 1)
    fwd_id = jax.jit(functools.partial(basic_block_forward, stride=1))
    y_id = fwd_id(p_id, x)

    jax.block_until_ready((y_ds, y_id))
    assert y_ds.shape == (2, 128, 8, 8)
    assert y_id.shape == (2, 64, 16, 16)

    # Loose tolerance: activations are bf16 end-to-end (GEMM operands and
    # outputs); the MXU accumulates and BN statistics are computed in f32.
    err_ds = float(jnp.max(jnp.abs(y_ds - basic_block_ref(p_ds, x, 2))))
    err_id = float(jnp.max(jnp.abs(y_id - basic_block_ref(p_id, x, 1))))
    assert err_ds < 0.15 and err_id < 0.15, (err_ds, err_id)

    print("KERNEL_OK")
</pallas_src>

<mosaic_0001>
module attributes {stable_mosaic.version = 11 : i64} {
  func.func @_gemm_kernel(%arg0: i32, %arg1: i32, %arg2: i32, %arg3: memref<64x640xbf16, #tpu.memory_space<vmem>>, %arg4: memref<640x128xbf16, #tpu.memory_space<vmem>>, %arg5: memref<64x128xbf16, #tpu.memory_space<vmem>>, %arg6: memref<1x8x128xf32, #tpu.memory_space<vmem>>) attributes {dimension_semantics = [#tpu.dimension_semantics<parallel>, #tpu.dimension_semantics<parallel>, #tpu.dimension_semantics<arbitrary>], iteration_bounds = array<i64: 2, 1, 1>, scalar_prefetch = 0 : i64, scratch_operands = 0 : i64, tpu.core_type = #tpu.core_type<tc>, window_params = [{transform_indices = @transform_0, window_bounds = array<i64: 64, 640>}, {transform_indices = @transform_1, window_bounds = array<i64: 640, 128>}, {transform_indices = @transform_2, window_bounds = array<i64: 64, 128>}, {transform_indices = @transform_3, window_bounds = array<i64: 1, 8, 128>}]} {
    %c0 = arith.constant 0 : index
    %c0_0 = arith.constant 0 : index
    %0 = vector.load %arg3[%c0, %c0_0] : memref<64x640xbf16, #tpu.memory_space<vmem>>, vector<64x640xbf16>
    %c0_1 = arith.constant 0 : index
    %c0_2 = arith.constant 0 : index
    %1 = vector.load %arg4[%c0_1, %c0_2] : memref<640x128xbf16, #tpu.memory_space<vmem>>, vector<640x128xbf16>
    %cst = arith.constant dense<0.000000e+00> : vector<64x128xf32>
    %2 = tpu.matmul %0, %1, %cst {dimension_numbers = #tpu.dot_dimension_numbers<[1], [0], [0], [1], [0, 0, 1, 1], [], []>} : vector<64x640xbf16>, vector<640x128xbf16>, vector<64x128xf32> -> vector<64x128xf32>
    %3 = arith.truncf %2 : vector<64x128xf32> to vector<64x128xbf16>
    %c0_3 = arith.constant 0 : index
    %c0_4 = arith.constant 0 : index
    %4 = vector.load %arg5[%c0_3, %c0_4] : memref<64x128xbf16, #tpu.memory_space<vmem>>, vector<64x128xbf16>
    tpu.vector_store %arg5[%c0_3, %c0_4], %3 {strides = array<i32>} : memref<64x128xbf16, #tpu.memory_space<vmem>>, vector<64x128xbf16>,
    %cst_5 = arith.constant dense<0.000000e+00> : vector<128xf32>
    %5 = vector.multi_reduction <add>, %2, %cst_5 [0] : vector<64x128xf32> to vector<128xf32>
    %6 = vector.shape_cast %5 : vector<128xf32> to vector<1x128xf32>
    %7 = arith.mulf %2, %2 : vector<64x128xf32>
    %cst_6 = arith.constant dense<0.000000e+00> : vector<128xf32>
    %8 = vector.multi_reduction <add>, %7, %cst_6 [0] : vector<64x128xf32> to vector<128xf32>
    %9 = vector.shape_cast %8 : vector<128xf32> to vector<1x128xf32>
    %10 = tpu.iota {dimensions = array<i32: 0>} : vector<8x128xi32>
    %c0_i32 = arith.constant 0 : i32
    %11 = vector.broadcast %c0_i32 : i32 to vector<8x128xi32>
    %12 = arith.cmpi eq, %10, %11 : vector<8x128xi32>
    %c1_i32 = arith.constant 1 : i32
    %13 = vector.broadcast %c1_i32 : i32 to vector<8x128xi32>
    %14 = arith.cmpi eq, %10, %13 : vector<8x128xi32>
    %cst_7 = arith.constant 0.000000e+00 : f32
    %15 = vector.shape_cast %9 : vector<1x128xf32> to vector<1x128xf32>
    %16 = vector.broadcast %15 : vector<1x128xf32> to vector<8x128xf32>
    %17 = vector.broadcast %cst_7 : f32 to vector<8x128xf32>
    %18 = arith.select %14, %16, %17 : vector<8x128xi1>, vector<8x128xf32>
    %19 = vector.shape_cast %6 : vector<1x128xf32> to vector<1x128xf32>
    %20 = vector.broadcast %19 : vector<1x128xf32> to vector<8x128xf32>
    %21 = arith.select %12, %20, %18 : vector<8x128xi1>, vector<8x128xf32>
    %22 = vector.shape_cast %21 : vector<8x128xf32> to vector<1x8x128xf32>
    %c0_8 = arith.constant 0 : index
    %c0_9 = arith.constant 0 : index
    %c0_10 = arith.constant 0 : index
    %23 = vector.load %arg6[%c0_8, %c0_9, %c0_10] : memref<1x8x128xf32, #tpu.memory_space<vmem>>, vector<1x8x128xf32>
    tpu.vector_store %arg6[%c0_8, %c0_9, %c0_10], %22 {strides = array<i32>} : memref<1x8x128xf32, #tpu.memory_space<vmem>>, vector<1x8x128xf32>,
    return
  }
  func.func @transform_0(%arg0: i32, %arg1: i32, %arg2: i32) -> (i32, i32) {
    %c0_i32 = arith.constant 0 : i32
    return %arg0, %arg2 : i32, i32
  }
  func.func @transform_1(%arg0: i32, %arg1: i32, %arg2: i32) -> (i32, i32) {
    %c0_i32 = arith.constant 0 : i32
    return %arg2, %arg1 : i32, i32
  }
  func.func @transform_2(%arg0: i32, %arg1: i32, %arg2: i32) -> (i32, i32) {
    %c0_i32 = arith.constant 0 : i32
    return %arg0, %arg1 : i32, i32
  }
  func.func @transform_3(%arg0: i32, %arg1: i32, %arg2: i32) -> (i32, i32, i32) {
    %c0_i32 = arith.constant 0 : i32
    %c0_i32_0 = arith.constant 0 : i32
    return %arg0, %c0_i32, %arg1 : i32, i32, i32
  }
}

module attributes {stable_mosaic.version = 11 : i64} {
  func.func @_gemm_kernel(%arg0: i32, %arg1: i32, %arg2: i32, %arg3: memref<64x1152xbf16, #tpu.memory_space<vmem>>, %arg4: memref<1x1152xf32, #tpu.memory_space<vmem>>, %arg5: memref<1x1152xf32, #tpu.memory_space<vmem>>, %arg6: memref<1152x128xbf16, #tpu.memory_space<vmem>>, %arg7: memref<64x128xbf16, #tpu.memory_space<vmem>>, %arg8: memref<1x8x128xf32, #tpu.memory_space<vmem>>) attributes {dimension_semantics = [#tpu.dimension_semantics<parallel>, #tpu.dimension_semantics<parallel>, #tpu.dimension_semantics<arbitrary>], iteration_bounds = array<i64: 2, 1, 1>, scalar_prefetch = 0 : i64, scratch_operands = 0 : i64, tpu.core_type = #tpu.core_type<tc>, window_params = [{transform_indices = @transform_0, window_bounds = array<i64: 64, 1152>}, {transform_indices = @transform_1, window_bounds = array<i64: 1, 1152>}, {transform_indices = @transform_2, window_bounds = array<i64: 1, 1152>}, {transform_indices = @transform_3, window_bounds = array<i64: 1152, 128>}, {transform_indices = @transform_4, window_bounds = array<i64: 64, 128>}, {transform_indices = @transform_5, window_bounds = array<i64: 1, 8, 128>}]} {
    %c0 = arith.constant 0 : index
    %c0_0 = arith.constant 0 : index
    %0 = vector.load %arg3[%c0, %c0_0] : memref<64x1152xbf16, #tpu.memory_space<vmem>>, vector<64x1152xbf16>
    %1 = arith.extf %0 : vector<64x1152xbf16> to vector<64x1152xf32>
    %c0_1 = arith.constant 0 : index
    %c0_2 = arith.constant 0 : index
    %2 = vector.load %arg4[%c0_1, %c0_2] : memref<1x1152xf32, #tpu.memory_space<vmem>>, vector<1x1152xf32>
    %3 = vector.broadcast %2 : vector<1x1152xf32> to vector<64x1152xf32>
    %4 = arith.mulf %1, %3 : vector<64x1152xf32>
    %c0_3 = arith.constant 0 : index
    %c0_4 = arith.constant 0 : index
    %5 = vector.load %arg5[%c0_3, %c0_4] : memref<1x1152xf32, #tpu.memory_space<vmem>>, vector<1x1152xf32>
    %6 = vector.broadcast %5 : vector<1x1152xf32> to vector<64x1152xf32>
    %7 = arith.addf %4, %6 : vector<64x1152xf32>
    %cst = arith.constant 0.000000e+00 : f32
    %8 = vector.broadcast %cst : f32 to vector<64x1152xf32>
    %9 = arith.maximumf %7, %8 : vector<64x1152xf32>
    %10 = arith.truncf %9 : vector<64x1152xf32> to vector<64x1152xbf16>
    %c0_5 = arith.constant 0 : index
    %c0_6 = arith.constant 0 : index
    %11 = vector.load %arg6[%c0_5, %c0_6] : memref<1152x128xbf16, #tpu.memory_space<vmem>>, vector<1152x128xbf16>
    %cst_7 = arith.constant dense<0.000000e+00> : vector<64x128xf32>
    %12 = tpu.matmul %10, %11, %cst_7 {dimension_numbers = #tpu.dot_dimension_numbers<[1], [0], [0], [1], [0, 0, 1, 1], [], []>} : vector<64x1152xbf16>, vector<1152x128xbf16>, vector<64x128xf32> -> vector<64x128xf32>
    %13 = arith.truncf %12 : vector<64x128xf32> to vector<64x128xbf16>
    %c0_8 = arith.constant 0 : index
    %c0_9 = arith.constant 0 : index
    %14 = vector.load %arg7[%c0_8, %c0_9] : memref<64x128xbf16, #tpu.memory_space<vmem>>, vector<64x128xbf16>
    tpu.vector_store %arg7[%c0_8, %c0_9], %13 {strides = array<i32>} : memref<64x128xbf16, #tpu.memory_space<vmem>>, vector<64x128xbf16>,
    %cst_10 = arith.constant dense<0.000000e+00> : vector<128xf32>
    %15 = vector.multi_reduction <add>, %12, %cst_10 [0] : vector<64x128xf32> to vector<128xf32>
    %16 = vector.shape_cast %15 : vector<128xf32> to vector<1x128xf32>
    %17 = arith.mulf %12, %12 : vector<64x128xf32>
    %cst_11 = arith.constant dense<0.000000e+00> : vector<128xf32>
    %18 = vector.multi_reduction <add>, %17, %cst_11 [0] : vector<64x128xf32> to vector<128xf32>
    %19 = vector.shape_cast %18 : vector<128xf32> to vector<1x128xf32>
    %20 = tpu.iota {dimensions = array<i32: 0>} : vector<8x128xi32>
    %c0_i32 = arith.constant 0 : i32
    %21 = vector.broadcast %c0_i32 : i32 to vector<8x128xi32>
    %22 = arith.cmpi eq, %20, %21 : vector<8x128xi32>
    %c1_i32 = arith.constant 1 : i32
    %23 = vector.broadcast %c1_i32 : i32 to vector<8x128xi32>
    %24 = arith.cmpi eq, %20, %23 : vector<8x128xi32>
    %cst_12 = arith.constant 0.000000e+00 : f32
    %25 = vector.shape_cast %19 : vector<1x128xf32> to vector<1x128xf32>
    %26 = vector.broadcast %25 : vector<1x128xf32> to vector<8x128xf32>
    %27 = vector.broadcast %cst_12 : f32 to vector<8x128xf32>
    %28 = arith.select %24, %26, %27 : vector<8x128xi1>, vector<8x128xf32>
    %29 = vector.shape_cast %16 : vector<1x128xf32> to vector<1x128xf32>
    %30 = vector.broadcast %29 : vector<1x128xf32> to vector<8x128xf32>
    %31 = arith.select %22, %30, %28 : vector<8x128xi1>, vector<8x128xf32>
    %32 = vector.shape_cast %31 : vector<8x128xf32> to vector<1x8x128xf32>
    %c0_13 = arith.constant 0 : index
    %c0_14 = arith.constant 0 : index
    %c0_15 = arith.constant 0 : index
    %33 = vector.load %arg8[%c0_13, %c0_14, %c0_15] : memref<1x8x128xf32, #tpu.memory_space<vmem>>, vector<1x8x128xf32>
    tpu.vector_store %arg8[%c0_13, %c0_14, %c0_15], %32 {strides = array<i32>} : memref<1x8x128xf32, #tpu.memory_space<vmem>>, vector<1x8x128xf32>,
    return
  }
  func.func @transform_0(%arg0: i32, %arg1: i32, %arg2: i32) -> (i32, i32) {
    %c0_i32 = arith.constant 0 : i32
    return %arg0, %arg2 : i32, i32
  }
  func.func @transform_1(%arg0: i32, %arg1: i32, %arg2: i32) -> (i32, i32) {
    %c0_i32 = arith.constant 0 : i32
    %c0_i32_0 = arith.constant 0 : i32
    return %c0_i32, %arg2 : i32, i32
  }
  func.func @transform_2(%arg0: i32, %arg1: i32, %arg2: i32) -> (i32, i32) {
    %c0_i32 = arith.constant 0 : i32
    %c0_i32_0 = arith.constant 0 : i32
    return %c0_i32, %arg2 : i32, i32
  }
  func.func @transform_3(%arg0: i32, %arg1: i32, %arg2: i32) -> (i32, i32) {
    %c0_i32 = arith.constant 0 : i32
    return %arg2, %arg1 : i32, i32
  }
  func.func @transform_4(%arg0: i32, %arg1: i32, %arg2: i32) -> (i32, i32) {
    %c0_i32 = arith.constant 0 : i32
    return %arg0, %arg1 : i32, i32
  }
  func.func @transform_5(%arg0: i32, %arg1: i32, %arg2: i32) -> (i32, i32, i32) {
    %c0_i32 = arith.constant 0 : i32
    %c0_i32_0 = arith.constant 0 : i32
    return %arg0, %c0_i32, %arg1 : i32, i32, i32
  }
}

module attributes {stable_mosaic.version = 11 : i64} {
  func.func @_residual_kernel(%arg0: i32, %arg1: memref<64x128xbf16, #tpu.memory_space<vmem>>, %arg2: memref<64x128xbf16, #tpu.memory_space<vmem>>, %arg3: memref<1x128xf32, #tpu.memory_space<vmem>>, %arg4: memref<1x128xf32, #tpu.memory_space<vmem>>, %arg5: memref<1x128xf32, #tpu.memory_space<vmem>>, %arg6: memref<64x128xbf16, #tpu.memory_space<vmem>>) attributes {dimension_semantics = [#tpu.dimension_semantics<parallel>], iteration_bounds = array<i64: 2>, scalar_prefetch = 0 : i64, scratch_operands = 0 : i64, tpu.core_type = #tpu.core_type<tc>, window_params = [{transform_indices = @transform_0, window_bounds = array<i64: 64, 128>}, {transform_indices = @transform_1, window_bounds = array<i64: 64, 128>}, {pipeline_mode = #tpu.pipeline_mode<synchronous>, transform_indices = @transform_2, window_bounds = array<i64: 1, 128>}, {pipeline_mode = #tpu.pipeline_mode<synchronous>, transform_indices = @transform_3, window_bounds = array<i64: 1, 128>}, {pipeline_mode = #tpu.pipeline_mode<synchronous>, transform_indices = @transform_4, window_bounds = array<i64: 1, 128>}, {transform_indices = @transform_5, window_bounds = array<i64: 64, 128>}]} {
    %c0 = arith.constant 0 : index
    %c0_0 = arith.constant 0 : index
    %0 = vector.load %arg1[%c0, %c0_0] : memref<64x128xbf16, #tpu.memory_space<vmem>>, vector<64x128xbf16>
    %1 = arith.extf %0 : vector<64x128xbf16> to vector<64x128xf32>
    %c0_1 = arith.constant 0 : index
    %c0_2 = arith.constant 0 : index
    %2 = vector.load %arg3[%c0_1, %c0_2] : memref<1x128xf32, #tpu.memory_space<vmem>>, vector<1x128xf32>
    %3 = vector.broadcast %2 : vector<1x128xf32> to vector<64x128xf32>
    %4 = arith.mulf %1, %3 : vector<64x128xf32>
    %c0_3 = arith.constant 0 : index
    %c0_4 = arith.constant 0 : index
    %5 = vector.load %arg2[%c0_3, %c0_4] : memref<64x128xbf16, #tpu.memory_space<vmem>>, vector<64x128xbf16>
    %6 = arith.extf %5 : vector<64x128xbf16> to vector<64x128xf32>
    %c0_5 = arith.constant 0 : index
    %c0_6 = arith.constant 0 : index
    %7 = vector.load %arg4[%c0_5, %c0_6] : memref<1x128xf32, #tpu.memory_space<vmem>>, vector<1x128xf32>
    %8 = vector.broadcast %7 : vector<1x128xf32> to vector<64x128xf32>
    %9 = arith.mulf %6, %8 : vector<64x128xf32>
    %10 = arith.addf %4, %9 : vector<64x128xf32>
    %c0_7 = arith.constant 0 : index
    %c0_8 = arith.constant 0 : index
    %11 = vector.load %arg5[%c0_7, %c0_8] : memref<1x128xf32, #tpu.memory_space<vmem>>, vector<1x128xf32>
    %12 = vector.broadcast %11 : vector<1x128xf32> to vector<64x128xf32>
    %13 = arith.addf %10, %12 : vector<64x128xf32>
    %cst = arith.constant 0.000000e+00 : f32
    %14 = vector.broadcast %cst : f32 to vector<64x128xf32>
    %15 = arith.maximumf %13, %14 : vector<64x128xf32>
    %16 = arith.truncf %15 : vector<64x128xf32> to vector<64x128xbf16>
    %c0_9 = arith.constant 0 : index
    %c0_10 = arith.constant 0 : index
    %17 = vector.load %arg6[%c0_9, %c0_10] : memref<64x128xbf16, #tpu.memory_space<vmem>>, vector<64x128xbf16>
    tpu.vector_store %arg6[%c0_9, %c0_10], %16 {strides = array<i32>} : memref<64x128xbf16, #tpu.memory_space<vmem>>, vector<64x128xbf16>,
    return
  }
  func.func @transform_0(%arg0: i32) -> (i32, i32) {
    %c0_i32 = arith.constant 0 : i32
    %c0_i32_0 = arith.constant 0 : i32
    return %arg0, %c0_i32 : i32, i32
  }
  func.func @transform_1(%arg0: i32) -> (i32, i32) {
    %c0_i32 = arith.constant 0 : i32
    %c0_i32_0 = arith.constant 0 : i32
    return %arg0, %c0_i32 : i32, i32
  }
  func.func @transform_2(%arg0: i32) -> (i32, i32) {
    %c0_i32 = arith.constant 0 : i32
    %c0_i32_0 = arith.constant 0 : i32
    %c0_i32_1 = arith.constant 0 : i32
    return %c0_i32, %c0_i32_0 : i32, i32
  }
  func.func @transform_3(%arg0: i32) -> (i32, i32) {
    %c0_i32 = arith.constant 0 : i32
    %c0_i32_0 = arith.constant 0 : i32
    %c0_i32_1 = arith.constant 0 : i32
    return %c0_i32, %c0_i32_0 : i32, i32
  }
  func.func @transform_4(%arg0: i32) -> (i32, i32) {
    %c0_i32 = arith.constant 0 : i32
    %c0_i32_0 = arith.constant 0 : i32
    %c0_i32_1 = arith.constant 0 : i32
    return %c0_i32, %c0_i32_0 : i32, i32
  }
  func.func @transform_5(%arg0: i32) -> (i32, i32) {
    %c0_i32 = arith.constant 0 : i32
    %c0_i32_0 = arith.constant 0 : i32
    return %arg0, %c0_i32 : i32, i32
  }
}

module attributes {stable_mosaic.version = 11 : i64} {
  func.func @_gemm_kernel(%arg0: i32, %arg1: i32, %arg2: i32, %arg3: memref<64x128xbf16, #tpu.memory_space<vmem>>, %arg4: memref<128x128xbf16, #tpu.memory_space<vmem>>, %arg5: memref<64x128xbf16, #tpu.memory_space<vmem>>, %arg6: memref<1x8x128xf32, #tpu.memory_space<vmem>>) attributes {dimension_semantics = [#tpu.dimension_semantics<parallel>, #tpu.dimension_semantics<parallel>, #tpu.dimension_semantics<arbitrary>], iteration_bounds = array<i64: 2, 1, 1>, scalar_prefetch = 0 : i64, scratch_operands = 0 : i64, tpu.core_type = #tpu.core_type<tc>, window_params = [{transform_indices = @transform_0, window_bounds = array<i64: 64, 128>}, {transform_indices = @transform_1, window_bounds = array<i64: 128, 128>}, {transform_indices = @transform_2, window_bounds = array<i64: 64, 128>}, {transform_indices = @transform_3, window_bounds = array<i64: 1, 8, 128>}]} {
    %c0 = arith.constant 0 : index
    %c0_0 = arith.constant 0 : index
    %0 = vector.load %arg3[%c0, %c0_0] : memref<64x128xbf16, #tpu.memory_space<vmem>>, vector<64x128xbf16>
    %c0_1 = arith.constant 0 : index
    %c0_2 = arith.constant 0 : index
    %1 = vector.load %arg4[%c0_1, %c0_2] : memref<128x128xbf16, #tpu.memory_space<vmem>>, vector<128x128xbf16>
    %cst = arith.constant dense<0.000000e+00> : vector<64x128xf32>
    %2 = tpu.matmul %0, %1, %cst {dimension_numbers = #tpu.dot_dimension_numbers<[1], [0], [0], [1], [0, 0, 1, 1], [], []>} : vector<64x128xbf16>, vector<128x128xbf16>, vector<64x128xf32> -> vector<64x128xf32>
    %3 = arith.truncf %2 : vector<64x128xf32> to vector<64x128xbf16>
    %c0_3 = arith.constant 0 : index
    %c0_4 = arith.constant 0 : index
    %4 = vector.load %arg5[%c0_3, %c0_4] : memref<64x128xbf16, #tpu.memory_space<vmem>>, vector<64x128xbf16>
    tpu.vector_store %arg5[%c0_3, %c0_4], %3 {strides = array<i32>} : memref<64x128xbf16, #tpu.memory_space<vmem>>, vector<64x128xbf16>,
    %cst_5 = arith.constant dense<0.000000e+00> : vector<128xf32>
    %5 = vector.multi_reduction <add>, %2, %cst_5 [0] : vector<64x128xf32> to vector<128xf32>
    %6 = vector.shape_cast %5 : vector<128xf32> to vector<1x128xf32>
    %7 = arith.mulf %2, %2 : vector<64x128xf32>
    %cst_6 = arith.constant dense<0.000000e+00> : vector<128xf32>
    %8 = vector.multi_reduction <add>, %7, %cst_6 [0] : vector<64x128xf32> to vector<128xf32>
    %9 = vector.shape_cast %8 : vector<128xf32> to vector<1x128xf32>
    %10 = tpu.iota {dimensions = array<i32: 0>} : vector<8x128xi32>
    %c0_i32 = arith.constant 0 : i32
    %11 = vector.broadcast %c0_i32 : i32 to vector<8x128xi32>
    %12 = arith.cmpi eq, %10, %11 : vector<8x128xi32>
    %c1_i32 = arith.constant 1 : i32
    %13 = vector.broadcast %c1_i32 : i32 to vector<8x128xi32>
    %14 = arith.cmpi eq, %10, %13 : vector<8x128xi32>
    %cst_7 = arith.constant 0.000000e+00 : f32
    %15 = vector.shape_cast %9 : vector<1x128xf32> to vector<1x128xf32>
    %16 = vector.broadcast %15 : vector<1x128xf32> to vector<8x128xf32>
    %17 = vector.broadcast %cst_7 : f32 to vector<8x128xf32>
    %18 = arith.select %14, %16, %17 : vector<8x128xi1>, vector<8x128xf32>
    %19 = vector.shape_cast %6 : vector<1x128xf32> to vector<1x128xf32>
    %20 = vector.broadcast %19 : vector<1x128xf32> to vector<8x128xf32>
    %21 = arith.select %12, %20, %18 : vector<8x128xi1>, vector<8x128xf32>
    %22 = vector.shape_cast %21 : vector<8x128xf32> to vector<1x8x128xf32>
    %c0_8 = arith.constant 0 : index
    %c0_9 = arith.constant 0 : index
    %c0_10 = arith.constant 0 : index
    %23 = vector.load %arg6[%c0_8, %c0_9, %c0_10] : memref<1x8x128xf32, #tpu.memory_space<vmem>>, vector<1x8x128xf32>
    tpu.vector_store %arg6[%c0_8, %c0_9, %c0_10], %22 {strides = array<i32>} : memref<1x8x128xf32, #tpu.memory_space<vmem>>, vector<1x8x128xf32>,
    return
  }
  func.func @transform_0(%arg0: i32, %arg1: i32, %arg2: i32) -> (i32, i32) {
    %c0_i32 = arith.constant 0 : i32
    return %arg0, %arg2 : i32, i32
  }
  func.func @transform_1(%arg0: i32, %arg1: i32, %arg2: i32) -> (i32, i32) {
    %c0_i32 = arith.constant 0 : i32
    return %arg2, %arg1 : i32, i32
  }
  func.func @transform_2(%arg0: i32, %arg1: i32, %arg2: i32) -> (i32, i32) {
    %c0_i32 = arith.constant 0 : i32
    return %arg0, %arg1 : i32, i32
  }
  func.func @transform_3(%arg0: i32, %arg1: i32, %arg2: i32) -> (i32, i32, i32) {
    %c0_i32 = arith.constant 0 : i32
    %c0_i32_0 = arith.constant 0 : i32
    return %arg0, %c0_i32, %arg1 : i32, i32, i32
  }
}

</mosaic_0001>

<bundles_post_ra>
// kernel: basic_block_forward.4
= control target key start
LH: loop header
LB: loop body
LE: loop exit
PB: predicated region body
PF: predicated region fallthrough
CT: control target
= control target key end

     0   :  { %s1521_s12 = smov 0   ;;  %s1523_s13 = smov 0   ;;  %s1708_s0 = inlined_call_operand.vmem [shape: bf16[128,640], index: 0, kind: input, shape index: {}]   ;;  %s1709_s1 = inlined_call_operand.vmem [shape: bf16[640,128], index: 1, kind: input, shape index: {}]   ;;  %s1710_s2 = inlined_call_operand.vmem [shape: bf16[128,128], index: 2, kind: output, shape index: {0}]   ;;  %s1711_s3 = inlined_call_operand.vmem [shape: f32[2,8,128], index: 3, kind: output, shape index: {1}]  }
   0x1   :  { %s1525_s14 = smov 0  }
   0x2 LB: > { %s33_s15 = sadd.s32 1, %s1495_s13  ;;  %p1145_p0 = scmp.ge.s32.totalorder %s1499_s14, 1  ;;  %s1499_s14 = sphi %s1525_s14, %s14_s14   ;;  %s1495_s13 = sphi %s1523_s13, %s1713_s13   ;;  %s1491_s12 = sphi %s1521_s12, %s1712_s12  }
   0x3   : > { %p35_p1 = scmp.ge.s32.totalorder %s33_s15, 2  ;;  %p188_p2 = scmp.lt.s32.totalorder %s1499_s14, 3 }
   0x5   : > { %s1715_s15 = smov (%p35_p1, %s33_s15), 0  ;;  %p189_p3 = pnand %p1145_p0, %p188_p2 }
   0x6   : > { %v1409_v0 = vld [vmem:[%s1709_s1 + $0x40] sm:$0xff] (!%p189_p3)   ;;  %v1413_v4 = vld [vmem:[%s1709_s1 + $0x48] sm:$0xff] (!%p189_p3)   ;;  %v1417_v8 = vld [vmem:[%s1709_s1 + $0x50] sm:$0xff] (!%p189_p3)   ;;  %s1146_s23 = sshll.u32 (!%p189_p3), %s1491_s12, 3  ;;  %p265_p5 = scmp.lt.s32.totalorder (!%p189_p3), %s1491_s12, 1 }
   0x7   : > { %192 = sbr.rel (%p189_p3) target bundleno = 321 (0x141), region = 28  ;;  %v1410_v1 = vld [vmem:[%s1709_s1 + $0xc0] sm:$0xff] (!%p189_p3)   ;;  %1252 = vmatprep.subr.bf16.mxu0 (!%p189_p3), %v1409_v0  ;;  %v1414_v5 = vld [vmem:[%s1709_s1 + $0xc8] sm:$0xff] (!%p189_p3)   ;;  %v1418_v9 = vld [vmem:[%s1709_s1 + $0xd0] sm:$0xff] (!%p189_p3)   ;;  %p237_p4 = scmp.lt.s32.totalorder (!%p189_p3), %s1146_s23, 15 }
   0x8   : > { %v1411_v2 = vld [vmem:[%s1709_s1] sm:$0xff] (!%p189_p3)   ;;  %1292 = vmatprep.subr.bf16.mxu1 (!%p189_p3), %v1410_v1  ;;  %v1415_v6 = vld [vmem:[%s1709_s1 + $0x8] sm:$0xff] (!%p189_p3)   ;;  %v1419_v10 = vld [vmem:[%s1709_s1 + $0x10] sm:$0xff] (!%p189_p3)  }
   0x9   : > { %v1412_v3 = vld [vmem:[%s1709_s1 + $0x80] sm:$0xff] (!%p189_p3)   ;;  %1253 = vmatpush3.bf16.msra.mxu0 (!%p189_p3), %v1411_v2  ;;  %v1416_v7 = vld [vmem:[%s1709_s1 + $0x88] sm:$0xff] (!%p189_p3)   ;;  %v1420_v11 = vld [vmem:[%s1709_s1 + $0x90] sm:$0xff] (!%p189_p3)  }
   0xa   : > { %1293 = vmatpush3.bf16.msra.mxu1 (!%p189_p3), %v1412_v3  ;;  %1254 = vmatprep.subr.bf16.mxu0 (!%p189_p3), %v1413_v4  ;;  %v1421_v12 = vld [vmem:[%s1709_s1 + $0x58] sm:$0xff] (!%p189_p3)   ;;  %v1425_v16 = vld [vmem:[%s1709_s1 + $0x60] sm:$0xff] (!%p189_p3)   ;;  %v1429_v20 = vld [vmem:[%s1709_s1 + $0x68] sm:$0xff] (!%p189_p3)  }
   0xb   : > { %1294 = vmatprep.subr.bf16.mxu1 (!%p189_p3), %v1414_v5  ;;  %v1422_v13 = vld [vmem:[%s1709_s1 + $0xd8] sm:$0xff] (!%p189_p3)   ;;  %v1426_v17 = vld [vmem:[%s1709_s1 + $0xe0] sm:$0xff] (!%p189_p3)   ;;  %v1430_v21 = vld [vmem:[%s1709_s1 + $0xe8] sm:$0xff] (!%p189_p3)  }
   0xc   : > { %v1423_v14 = vld [vmem:[%s1709_s1 + $0x18] sm:$0xff] (!%p189_p3)   ;;  %v1427_v18 = vld [vmem:[%s1709_s1 + $0x20] sm:$0xff] (!%p189_p3)   ;;  %v1431_v22 = vld [vmem:[%s1709_s1 + $0x28] sm:$0xff] (!%p189_p3)  }
   0xd   : > { %1255 = vmatpush3.bf16.msra.mxu0 (!%p189_p3), %v1415_v6  ;;  %v1424_v15 = vld [vmem:[%s1709_s1 + $0x98] sm:$0xff] (!%p189_p3)   ;;  %v1428_v19 = vld [vmem:[%s1709_s1 + $0xa0] sm:$0xff] (!%p189_p3)   ;;  %v1432_v23 = vld [vmem:[%s1709_s1 + $0xa8] sm:$0xff] (!%p189_p3)  }
   0xe   : > { %1295 = vmatpush3.bf16.msra.mxu1 %v1416_v7  ;;  %1256 = vmatprep.subr.bf16.mxu0 %v1417_v8  ;;  %s1717_s23 = smov (!%p237_p4, %s1146_s23), 15  ;;  %v1433_v24 = vld [vmem:[%s1709_s1 + $0x70] sm:$0xff]   ;;  %v1437_v28 = vld [vmem:[%s1709_s1 + $0x78] sm:$0xff]   ;;  %v1447_v36 = vld [vmem:[%s1709_s1 + $0x100] sm:$0xff]   ;;  %s1719_s12 = smov (!%p265_p5, %s1491_s12), 1 }
   0xf   : > { %1296 = vmatprep.subr.bf16.mxu1 %v1418_v9  ;;  %v1434_v25 = vld [vmem:[%s1709_s1 + $0xf0] sm:$0xff]   ;;  %s1384_s24 = smul.u32 20, %s1717_s23  ;;  %v1438_v29 = vld [vmem:[%s1709_s1 + $0xf8] sm:$0xff]   ;;  %v1448_v37 = vld [vmem:[%s1709_s1 + $0x108] sm:$0xff]   ;;  %s1149_s7 = sshll.u32 %s1717_s23, 2 }
  0x10   : > { %v1435_v26 = vld [vmem:[%s1709_s1 + $0x30] sm:$0xff]   ;;  %v1439_v30 = vld [vmem:[%s1709_s1 + $0x38] sm:$0xff]   ;;  %v1463_v46 = vld [vmem:[%s1709_s1 + $0x120] sm:$0xff]   ;;  %s263_s10 = scalar_lea.vmem %s1710_s2, %s1149_s7  ;;  %s1150_s23 = sshll.u32 %s1719_s12, 3 }
  0x11   : > { %1257 = vmatpush3.bf16.msra.mxu0 %v1419_v10  ;;  %v1436_v27 = vld [vmem:[%s1709_s1 + $0xb0] sm:$0xff]   ;;  %s1638_s8 = scalar_lea.vmem %s1708_s0, %s1384_s24  ;;  %v1440_v31 = vld [vmem:[%s1709_s1 + $0xb8] sm:$0xff]   ;;  %v1464_v51 = vld [vmem:[%s1709_s1 + $0x128] sm:$0xff]   ;;  %s271_s17 = scalar_lea.vmem %s1711_s3, %s1150_s23 }
  0x12   : > { %1297 = vmatpush3.bf16.msra.mxu1 %v1420_v11  ;;  %1258 = vmatprep.subr.bf16.mxu0 %v1421_v12  ;;  %v1441_v32 = vld [vmem:[%s1638_s8] ss:$20 sps:$4 sm:$0xff]   ;;  %v1443_v33 = vld [vmem:[%s1638_s8 + $0x4] ss:$20 sps:$4 sm:$0xff]   ;;  %v1444_v34 = vld [vmem:[%s1638_s8 + $0x8] ss:$20 sps:$4 sm:$0xff]  }
  0x13   : > { %1298 = vmatprep.subr.bf16.mxu1 %v1422_v13  ;;  %v1446_v35 = vld [vmem:[%s1638_s8 + $0xc] ss:$20 sps:$4 sm:$0xff]   ;;  %753 = vmatprep.mubr.bf16.mxu0 %v1443_v33  ;;  %v1451_v39 = vld [vmem:[%s1638_s8 + $0x34] ss:$20 sps:$4 sm:$0xff]   ;;  %v1454_v42 = vld [vmem:[%s1638_s8 + $0x30] ss:$20 sps:$4 sm:$0xff]  }
  0x14   : > { %818 = vmatprep.mubr.bf16.mxu1 %v1446_v35  ;;  %v1449_v38 = vld [vmem:[%s1638_s8 + $0x2c] ss:$20 sps:$4 sm:$0xff]   ;;  %v1453_v40 = vld [vmem:[%s1638_s8 + $0x28] ss:$20 sps:$4 sm:$0xff]   ;;  %v1455_v41 = vld [vmem:[%s1709_s1 + $0x110] sm:$0xff]  }
  0x15   : > { %1259 = vmatpush3.bf16.msra.mxu0 %v1423_v14  ;;  %v1457_v43 = vld [vmem:[%s1638_s8 + $0x54] ss:$20 sps:$4 sm:$0xff]   ;;  %v1456_v44 = vld [vmem:[%s1709_s1 + $0x118] sm:$0xff]   ;;  %v1461_v47 = vld [vmem:[%s1638_s8 + $0x50] ss:$20 sps:$4 sm:$0xff]  }
  0x16   : > { %1299 = vmatpush3.bf16.msra.mxu1 %v1424_v15  ;;  %1260 = vmatprep.subr.bf16.mxu0 %v1425_v16  ;;  %v1459_v45 = vld [vmem:[%s1638_s8 + $0x5c] ss:$20 sps:$4 sm:$0xff]   ;;  %v1462_v48 = vld [vmem:[%s1638_s8 + $0x58] ss:$20 sps:$4 sm:$0xff]   ;;  %v1470_v54 = vld [vmem:[%s1638_s8 + $0x80] ss:$20 sps:$4 sm:$0xff]  }
  0x17   : > { %1300 = vmatprep.subr.bf16.mxu1 %v1426_v17  ;;  %v1465_v49 = vld [vmem:[%s1638_s8 + $0x7c] ss:$20 sps:$4 sm:$0xff]   ;;  %v1467_v50 = vld [vmem:[%s1638_s8 + $0x84] ss:$20 sps:$4 sm:$0xff]   ;;  %v1474_v56 = vld [vmem:[%s1638_s8 + $0x60] ss:$20 sps:$4 sm:$0xff]  }
  0x18   : > { %v1471_v52 = vld [vmem:[%s1709_s1 + $0x130] sm:$0xff]   ;;  %v1469_v53 = vld [vmem:[%s1638_s8 + $0x78] ss:$20 sps:$4 sm:$0xff]   ;;  %v1476_v59 = vld [vmem:[%s1638_s8 + $0x88] ss:$20 sps:$4 sm:$0xff]  }
  0x19   : > { %1261 = vmatpush3.bf16.msra.mxu0 %v1427_v18  ;;  %v1473_v55 = vld [vmem:[%s1638_s8 + $0x10] ss:$20 sps:$4 sm:$0xff]   ;;  %v1472_v57 = vld [vmem:[%s1709_s1 + $0x138] sm:$0xff]  }
  0x1a   : > { %1301 = vmatpush3.bf16.msra.mxu1 %v1428_v19  ;;  %1262 = vmatprep.subr.bf16.mxu0 %v1429_v20  ;;  %v1475_v58 = vld [vmem:[%s1638_s8 + $0x38] ss:$20 sps:$4 sm:$0xff]  }
  0x1b   : > { %1302 = vmatprep.subr.bf16.mxu1 %v1430_v21 }
  0x1d   : > { %1263 = vmatpush3.bf16.msra.mxu0 %v1431_v22 }
  0x1e   : > { %1303 = vmatpush3.bf16.msra.mxu1 %v1432_v23  ;;  %1264 = vmatprep.subr.bf16.mxu0 %v1433_v24 }
  0x1f   : > { %1304 = vmatprep.subr.bf16.mxu1 %v1434_v25 }
  0x21   : > { %1265 = vmatpush3.bf16.msra.mxu0 %v1435_v26 }
  0x22   : > { %1305 = vmatpush3.bf16.msra.mxu1 %v1436_v27  ;;  %1266 = vmatprep.subr.bf16.mxu0 %v1437_v28 }
  0x23   : > { %1306 = vmatprep.subr.bf16.mxu1 %v1438_v29 }
  0x25   : > { %1267 = vmatpush3.bf16.msra.mxu0 %v1439_v30 }
  0x26   : > { %1307 = vmatpush3.bf16.msra.mxu1 %v1440_v31  ;;  %1344 = vmatprep.subr.bf16.mxu0 %v1447_v36 }
  0x27   : > { %1368 = vmatprep.subr.bf16.mxu1 %v1447_v36 }
  0x28   : > { %754 = vmatmul.mubr.bf16.vlgmr.msra.gmra.mrb[0].mxu0 %v1441_v32 }
  0x29   : > { %819 = vmatmul.mubr.bf16.vlgmr.msra.gmra.mrb[0].mxu1 %v1444_v34  ;;  %1345 = vmatpush3.bf16.msra.mxu0 %v1447_v36 }
  0x2a   : > { %1376 = vmatpush3.bf16.msra.mxu1 %v1447_v36  ;;  %1346 = vmatprep.subr.bf16.mxu0 %v1448_v37 }
  0x2b   : > { %1369 = vmatprep.subr.bf16.mxu1 %v1448_v37  ;;  %761 = vmatprep.mubr.bf16.mxu0 %v1449_v38 }
  0x2c   : > { %826 = vmatprep.mubr.bf16.mxu1 %v1451_v39 }
  0x2d   : > { %1347 = vmatpush3.bf16.msra.mxu0 %v1448_v37 }
  0x2e   : > { %1377 = vmatpush3.bf16.msra.mxu1 %v1448_v37  ;;  %1348 = vmatprep.subr.bf16.mxu0 %v1455_v41 }
  0x2f   : > { %1370 = vmatprep.subr.bf16.mxu1 %v1455_v41 }
  0x30   : > { %762 = vmatmul.mubr.bf16.gmra.mrb[4].mxu0 %v1453_v40 }
  0x31   : > { %827 = vmatmul.mubr.bf16.gmra.mrb[4].mxu1 %v1454_v42  ;;  %769 = vmatprep.mubr.bf16.mxu0 %v1457_v43 }
  0x32   : > { %1349 = vmatpush3.bf16.msra.mxu0 %v1455_v41  ;;  %834 = vmatprep.mubr.bf16.mxu1 %v1459_v45 }
  0x33   : > { %1378 = vmatpush3.bf16.msra.mxu1 %v1455_v41  ;;  %1350 = vmatprep.subr.bf16.mxu0 %v1456_v44 }
  0x34   : > { %1371 = vmatprep.subr.bf16.mxu1 %v1456_v44 }
  0x36   : > { %1351 = vmatpush3.bf16.msra.mxu0 %v1456_v44 }
  0x37   : > { %1379 = vmatpush3.bf16.msra.mxu1 %v1456_v44  ;;  %1352 = vmatprep.subr.bf16.mxu0 %v1463_v46 }
  0x38   : > { %770 = vmatmul.mubr.bf16.gmra.mrb[8].mxu0 %v1461_v47  ;;  %1372 = vmatprep.subr.bf16.mxu1 %v1463_v46 }
  0x39   : > { %835 = vmatmul.mubr.bf16.gmra.mrb[8].mxu1 %v1462_v48  ;;  %777 = vmatprep.mubr.bf16.mxu0 %v1465_v49 }
  0x3a   : > { %1353 = vmatpush3.bf16.msra.mxu0 %v1463_v46  ;;  %842 = vmatprep.mubr.bf16.mxu1 %v1467_v50 }
  0x3b   : > { %1380 = vmatpush3.bf16.msra.mxu1 %v1463_v46  ;;  %1354 = vmatprep.subr.bf16.mxu0 %v1464_v51 }
  0x3c   : > { %1373 = vmatprep.subr.bf16.mxu1 %v1464_v51 }
  0x3e   : > { %1355 = vmatpush3.bf16.msra.mxu0 %v1464_v51 }
  0x3f   : > { %1381 = vmatpush3.bf16.msra.mxu1 %v1464_v51  ;;  %1356 = vmatprep.subr.bf16.mxu0 %v1471_v52 }
  0x40   : > { %778 = vmatmul.mubr.bf16.gmra.mrb[12].mxu0 %v1469_v53  ;;  %1374 = vmatprep.subr.bf16.mxu1 %v1471_v52 }
  0x41   : > { %843 = vmatmul.mubr.bf16.gmra.mrb[12].mxu1 %v1470_v54  ;;  %1360 = vmatprep.mubr.bf16.mxu0 %v1473_v55 }
  0x42   : > { %1357 = vmatpush3.bf16.msra.mxu0 %v1471_v52  ;;  %1364 = vmatprep.mubr.bf16.mxu1 %v1474_v56 }
  0x43   : > { %1382 = vmatpush3.bf16.msra.mxu1 %v1471_v52  ;;  %1358 = vmatprep.subr.bf16.mxu0 %v1472_v57 }
  0x44   : > { %1375 = vmatprep.subr.bf16.mxu1 %v1472_v57 }
  0x46   : > { %1359 = vmatpush3.bf16.msra.mxu0 %v1472_v57 }
  0x47   : > { %1383 = vmatpush3.bf16.msra.mxu1 %v1472_v57 }
  0x49   : > { %1361 = vmatmul.mubr.bf16.vlgmr.msra.gmra.mrb[16].mxu0 %v1475_v58 }
  0x4a   : > { %1365 = vmatmul.mubr.bf16.vlgmr.msra.gmra.mrb[16].mxu1 %v1476_v59 }
  0xfb   : > { %v1268_v60 = vpop.f32.mrb[0].mxu0 }
  0xfc   : > { %v1308_v61 = vpop.f32.mrb[0].mxu1  ;;  %v1269_v62 = vpop.f32.mrb[1].mxu0 }
  0xfd   : > { %v1270_v63 = vadd.f32 %v1269_v62, %v1268_v60  ;;  %v1309_v0 = vpop.f32.mrb[1].mxu1  ;;  %v1271_v1 = vpop.f32.mrb[2].mxu0 }
  0xfe   : > { %v1310_v2 = vadd.f32 %v1309_v0, %v1308_v61  ;;  %v1311_v3 = vpop.f32.mrb[2].mxu1  ;;  %v1272_v4 = vpop.f32.mrb[3].mxu0 }
  0xff   : > { %v1273_v5 = vadd.f32 %v1272_v4, %v1271_v1  ;;  %v1312_v6 = vpop.f32.mrb[3].mxu1 }
 0x100   : > { %v1313_v7 = vadd.f32 %v1312_v6, %v1311_v3  ;;  %v821_v8 = vadd.f32 %v1310_v2, %v1270_v63 }
 0x102   : > { %v824_v9 = vadd.f32 %v1313_v7, %v1273_v5 }
 0x103   : > { %v1274_v10 = vpop.f32.mrb[4].mxu0 }
 0x104   : > { %v1314_v11 = vpop.f32.mrb[4].mxu1  ;;  %v1275_v12 = vpop.f32.mrb[5].mxu0 }
 0x105   : > { %v1276_v13 = vadd.f32 %v1275_v12, %v1274_v10  ;;  %v1315_v14 = vpop.f32.mrb[5].mxu1  ;;  %v1277_v15 = vpop.f32.mrb[6].mxu0 }
 0x106   : > { %v1316_v16 = vadd.f32 %v1315_v14, %v1314_v11  ;;  %v1317_v17 = vpop.f32.mrb[6].mxu1  ;;  %v1278_v18 = vpop.f32.mrb[7].mxu0 }
 0x107   : > { %v1279_v19 = vadd.f32 %v1278_v18, %v1277_v15  ;;  %v1318_v20 = vpop.f32.mrb[7].mxu1 }
 0x108   : > { %v1319_v21 = vadd.f32 %v1318_v20, %v1317_v17  ;;  %v829_v22 = vadd.f32 %v1316_v16, %v1276_v13 }
 0x10a   : > { %v832_v23 = vadd.f32 %v1319_v21, %v1279_v19 }
 0x10b   : > { %v1280_v24 = vpop.f32.mrb[8].mxu0 }
 0x10c   : > { %v1320_v25 = vpop.f32.mrb[8].mxu1  ;;  %v1281_v26 = vpop.f32.mrb[9].mxu0 }
 0x10d   : > { %v1282_v27 = vadd.f32 %v1281_v26, %v1280_v24  ;;  %v1321_v28 = vpop.f32.mrb[9].mxu1  ;;  %v1283_v29 = vpop.f32.mrb[10].mxu0 }
 0x10e   : > { %v1322_v30 = vadd.f32 %v1321_v28, %v1320_v25  ;;  %v1323_v31 = vpop.f32.mrb[10].mxu1  ;;  %v1284_v32 = vpop.f32.mrb[11].mxu0 }
 0x10f   : > { %v1285_v33 = vadd.f32 %v1284_v32, %v1283_v29  ;;  %v1324_v34 = vpop.f32.mrb[11].mxu1 }
 0x110   : > { %v1325_v35 = vadd.f32 %v1324_v34, %v1323_v31  ;;  %v837_v36 = vadd.f32 %v1322_v30, %v1282_v27  ;;  %v990_v34 = vlaneseq }
 0x112   : > { %v840_v37 = vadd.f32 %v1325_v35, %v1285_v33 }
 0x113   : > { %v1286_v38 = vpop.f32.mrb[12].mxu0 }
 0x114   : > { %v1326_v39 = vpop.f32.mrb[12].mxu1  ;;  %v1287_v40 = vpop.f32.mrb[13].mxu0 }
 0x115   : > { %v1288_v41 = vadd.f32 %v1287_v40, %v1286_v38  ;;  %v1327_v42 = vpop.f32.mrb[13].mxu1  ;;  %v1289_v43 = vpop.f32.mrb[14].mxu0  ;;  %v991_v38 = vshrl.u32 %v990_v34, 7 }
 0x116   : > { %v1328_v44 = vadd.f32 %v1327_v42, %v1326_v39  ;;  %v1329_v45 = vpop.f32.mrb[14].mxu1  ;;  %v1290_v46 = vpop.f32.mrb[15].mxu0 }
 0x117   : > { %v1291_v47 = vadd.f32 %v1290_v46, %v1289_v43  ;;  %v1330_v48 = vpop.f32.mrb[15].mxu1  ;;  %vm993_vm0 = vcmp.eq.s32.totalorder %v991_v38, 1  ;;  %vm992_vm1 = vcmp.eq.s32.totalorder %v991_v38, 0 }
 0x118   : > { %v1331_v49 = vadd.f32 %v1330_v48, %v1329_v45  ;;  %v845_v50 = vadd.f32 %v1328_v44, %v1288_v41 }
 0x11a   : > { %v848_v51 = vadd.f32 %v1331_v49, %v1291_v47 }
 0x11c   : > { %v1362_v52 = vpop.f32.mrb[16].mxu0 }
 0x11d   : > { %v894_v53 = vadd.f32 %v1362_v52, %v829_v22  ;;  %v1366_v54 = vpop.f32.mrb[16].mxu1  ;;  %v885_v55 = vpop.f32.mrb[17].mxu0 }
 0x11e   : > { %v910_v56 = vadd.f32 %v1366_v54, %v845_v50  ;;  %v886_v57 = vadd.f32 %v885_v55, %v821_v8  ;;  %v901_v58 = vpop.f32.mrb[17].mxu1  ;;  %v1363_v59 = vpop.f32.mrb[18].mxu0 }
 0x11f   : > { %v902_v60 = vadd.f32 %v901_v58, %v837_v36  ;;  %v897_v61 = vadd.f32 %v1363_v59, %v832_v23  ;;  %v1367_v62 = vpop.f32.mrb[18].mxu1  ;;  %v888_v63 = vpop.f32.mrb[19].mxu0  ;;  %v971_v13 = vmul.f32 %v894_v53, %v894_v53 }
 0x120   : > { %v913_v0 = vadd.f32 %v1367_v62, %v848_v51  ;;  %v889_v1 = vadd.f32 %v888_v63, %v824_v9  ;;  %v904_v2 = vpop.f32.mrb[19].mxu1  ;;  %v969_v10 = vmul.f32 %v886_v57, %v886_v57  ;;  %v975_v24 = vmul.f32 %v910_v56, %v910_v56 }
 0x121   : > { %v1237_v3 = vpack.c.bf16 %v897_v61, %v894_v53  ;;  %v905_v4 = vadd.f32 %v904_v2, %v840_v37  ;;  %v972_v16 = vmul.f32 %v897_v61, %v897_v61  ;;  %v973_v18 = vmul.f32 %v902_v60, %v902_v60 }
 0x122   : > { %v1247_v5 = vpack.c.bf16 %v913_v0, %v910_v56  ;;  %v1232_v6 = vpack.c.bf16 %v889_v1, %v886_v57  ;;  %v956_v7 = vadd.f32 %v889_v1, %v886_v57  ;;  %v970_v8 = vmul.f32 %v889_v1, %v889_v1 }
 0x123   : > { %1249 = vst [vmem:[%s263_s10 + $0x8] sm:$0xff] %v1237_v3   ;;  %v1242_v11 = vpack.c.bf16 %v905_v4, %v902_v60  ;;  %v974_v21 = vmul.f32 %v905_v4, %v905_v4  ;;  %v976_v27 = vmul.f32 %v913_v0, %v913_v0 }
 0x124   : > { %1251 = vst [vmem:[%s263_s10 + $0x18] sm:$0xff] %v1247_v5   ;;  %1233 = vst [vmem:[%s263_s10] sm:$0xff] %v1232_v6   ;;  %v957_v12 = vadd.f32 %v956_v7, %v894_v53  ;;  %v977_v14 = vadd.f32 %v970_v8, %v969_v10 }
 0x125   : > { %1250 = vst [vmem:[%s263_s10 + $0x10] sm:$0xff] %v1242_v11  }
 0x126   : > { %v958_v15 = vadd.f32 %v957_v12, %v897_v61  ;;  %v978_v17 = vadd.f32 %v977_v14, %v971_v13 }
 0x128   : > { %v959_v9 = vadd.f32 %v958_v15, %v902_v60  ;;  %v979_v19 = vadd.f32 %v978_v17, %v972_v16 }
 0x12a   : > { %v960_v20 = vadd.f32 %v959_v9, %v905_v4  ;;  %v980_v22 = vadd.f32 %v979_v19, %v973_v18 }
 0x12c   : > { %v961_v23 = vadd.f32 %v960_v20, %v910_v56  ;;  %v981_v25 = vadd.f32 %v980_v22, %v974_v21 }
 0x12e   : > { %v962_v26 = vadd.f32 %v961_v23, %v913_v0  ;;  %v982_v28 = vadd.f32 %v981_v25, %v975_v24 }
 0x130   : > { %v963_v29 = vrot.slane %v962_v26, 4  ;;  %v983_v30 = vadd.f32 %v982_v28, %v976_v27 }
 0x132   : > { %v964_v31 = vadd.f32 %v963_v29, %v962_v26  ;;  %v984_v32 = vrot.slane %v983_v30, 4 }
 0x134   : > { %v965_v33 = vrot.slane %v964_v31, 2  ;;  %v985_v35 = vadd.f32 %v984_v32, %v983_v30 }
 0x136   : > { %v966_v36 = vadd.f32 %v965_v33, %v964_v31  ;;  %v986_v37 = vrot.slane %v985_v35, 2 }
 0x138   : > { %v987_v39 = vadd.f32 %v986_v37, %v985_v35  ;;  %v967_v40 = vrot.slane %v966_v36, 1 }
 0x13a   : > { %v988_v41 = vrot.slane %v987_v39, 1  ;;  %v968_v43 = vadd.f32 %v967_v40, %v966_v36 }
 0x13c   : > { %v989_v42 = vadd.f32 %v988_v41, %v987_v39 }
 0x13e   : > { %v994_v44 = vsel %vm993_vm0, %v989_v42, 0.0 }
 0x13f   : > { %v995_v45 = vsel %vm992_vm1, %v968_v43, %v994_v44 }
 0x140   : > { %996 = vst [vmem:[%s271_s17] sm:$0xff] %v995_v45 }
 0x141 PF: > { %s14_s14 = sadd.s32 1, %s1499_s14   ;;  %s1712_s12 = smov %s1495_s13 }
 0x142   : > { %p11_p6 = scmp.ge.s32.totalorder %s14_s14, 4   ;;  %s1713_s13 = smov %s1715_s15 }
 0x144   :  { %13 = sbr.rel (!%p11_p6) target bundleno = 2 (0x2), region = 73 }

// kernel: basic_block_forward.7
= control target key start
LH: loop header
LB: loop body
LE: loop exit
PB: predicated region body
PF: predicated region fallthrough
CT: control target
= control target key end

     0   :  { %s590_s18 = smov 0   ;;  %s646_s0 = inlined_call_operand.vmem [shape: bf16[128,128], index: 0, kind: input, shape index: {}]   ;;  %s647_s1 = inlined_call_operand.vmem [shape: bf16[128,128], index: 1, kind: input, shape index: {}]   ;;  %s648_s2 = inlined_call_operand.vmem [shape: f32[1,128], index: 2, kind: input, shape index: {}]   ;;  %s649_s3 = inlined_call_operand.vmem [shape: f32[1,128], index: 3, kind: input, shape index: {}]   ;;  %s650_s4 = inlined_call_operand.vmem [shape: f32[1,128], index: 4, kind: input, shape index: {}]   ;;  %s651_s5 = inlined_call_operand.vmem [shape: bf16[128,128], index: 5, kind: output, shape index: {}]  }
   0x1 LB: > { %s451_s19 = sadd.s32 4294967295, %s558_s18   ;;  %p455_p0 = scmp.ge.s32.totalorder %s558_s18, 1  ;;  %s558_s18 = sphi %s590_s18, %s15_s18  }
   0x2   : > { %p199_p1 = scmp.lt.s32.totalorder %s558_s18, 3 }
   0x4   : > { %p200_p2 = pnand %p455_p0, %p199_p1 }
   0x5   : > { %s456_s20 = sshll.u32 (!%p200_p2), %s451_s19, 3  ;;  %v462_v0 = vld [vmem:[%s648_s2] ss:$0 sm:$0xff] (!%p200_p2) }
   0x6   : > { %203 = sbr.rel (%p200_p2) target bundleno = 41 (0x29), region = 40  ;;  %p233_p3 = scmp.lt.s32.totalorder (!%p200_p2), %s456_s20, 15  ;;  %v618_v1 = vld [vmem:[%s649_s3] ss:$0 sm:$0xff] (!%p200_p2) }
   0x7   : > { %v464_v20 = vld [vmem:[%s650_s4] ss:$0 sm:$0xff] (!%p200_p2) }
   0xd   : > { %s653_s20 = smov (!%p233_p3, %s456_s20), 15 }
   0xe   : > { %s598_s21 = sshll.u32 %s653_s20, 2 }
   0xf   : > { %s604_s24 = scalar_lea.vmem %s646_s0, %s598_s21  ;;  %s610_s27 = scalar_lea.vmem %s647_s1, %s598_s21 }
  0x10   : > { %v484_v2 = vld [vmem:[%s604_s24] sm:$0xff]   ;;  %v535_v4 = vld [vmem:[%s604_s24 + $0x8] sm:$0xff]   ;;  %v536_v14 = vld [vmem:[%s604_s24 + $0x10] sm:$0xff]   ;;  %s248_s11 = scalar_lea.vmem %s651_s5, %s598_s21 }
  0x11   : > { %v500_v3 = vld [vmem:[%s610_s27] sm:$0xff]   ;;  %v485_v5 = vunpack.c.l.bf16 %v484_v2  ;;  %v486_v6 = vunpack.c.h.bf16 %v484_v2  ;;  %v538_v9 = vld [vmem:[%s610_s27 + $0x8] sm:$0xff]   ;;  %v489_v10 = vunpack.c.l.bf16 %v535_v4  ;;  %v490_v11 = vunpack.c.h.bf16 %v535_v4  ;;  %v539_v19 = vld [vmem:[%s610_s27 + $0x10] sm:$0xff]  }
  0x12   : > { %v501_v7 = vunpack.c.l.bf16 %v500_v3  ;;  %v502_v8 = vunpack.c.h.bf16 %v500_v3  ;;  %v505_v12 = vunpack.c.l.bf16 %v538_v9  ;;  %v506_v13 = vunpack.c.h.bf16 %v538_v9  ;;  %v537_v33 = vld [vmem:[%s604_s24 + $0x18] sm:$0xff]  }
  0x13   : > { %v273_v15 = vmul.f32 %v485_v5, %v462_v0  ;;  %v274_v16 = vmul.f32 %v486_v6, %v462_v0  ;;  %v275_v21 = vmul.f32 %v489_v10, %v462_v0  ;;  %v276_v22 = vmul.f32 %v490_v11, %v462_v0  ;;  %v540_v42 = vld [vmem:[%s610_s27 + $0x18] sm:$0xff]  }
  0x14   : > { %v304_v17 = vmul.f32 %v501_v7, %v618_v1  ;;  %v305_v18 = vmul.f32 %v502_v8, %v618_v1  ;;  %v306_v23 = vmul.f32 %v505_v12, %v618_v1  ;;  %v307_v24 = vmul.f32 %v506_v13, %v618_v1 }
  0x15   : > { %v493_v27 = vunpack.c.l.bf16 %v536_v14  ;;  %v494_v28 = vunpack.c.h.bf16 %v536_v14  ;;  %v509_v31 = vunpack.c.l.bf16 %v539_v19  ;;  %v510_v32 = vunpack.c.h.bf16 %v539_v19 }
  0x16   : > { %v312_v25 = vadd.f32 %v304_v17, %v273_v15  ;;  %v313_v26 = vadd.f32 %v305_v18, %v274_v16  ;;  %v314_v29 = vadd.f32 %v306_v23, %v275_v21  ;;  %v315_v30 = vadd.f32 %v307_v24, %v276_v22 }
  0x17   : > { %v277_v36 = vmul.f32 %v493_v27, %v462_v0  ;;  %v278_v37 = vmul.f32 %v494_v28, %v462_v0  ;;  %v308_v40 = vmul.f32 %v509_v31, %v618_v1  ;;  %v309_v41 = vmul.f32 %v510_v32, %v618_v1 }
  0x18   : > { %v327_v34 = vadd.f32 %v464_v20, %v312_v25  ;;  %v328_v35 = vadd.f32 %v464_v20, %v313_v26  ;;  %v329_v38 = vadd.f32 %v464_v20, %v314_v29  ;;  %v330_v39 = vadd.f32 %v464_v20, %v315_v30 }
  0x19   : > { %v497_v45 = vunpack.c.l.bf16 %v537_v33  ;;  %v498_v46 = vunpack.c.h.bf16 %v537_v33  ;;  %v316_v49 = vadd.f32 %v308_v40, %v277_v36  ;;  %v317_v50 = vadd.f32 %v309_v41, %v278_v37 }
  0x1a   : > { %v335_v43 = vmax.f32 %v327_v34, 0.0  ;;  %v336_v44 = vmax.f32 %v328_v35, 0.0  ;;  %v337_v47 = vmax.f32 %v329_v38, 0.0  ;;  %v338_v48 = vmax.f32 %v330_v39, 0.0 }
  0x1b   : > { %v279_v52 = vmul.f32 %v497_v45, %v462_v0  ;;  %v280_v53 = vmul.f32 %v498_v46, %v462_v0  ;;  %v513_v54 = vunpack.c.l.bf16 %v540_v42  ;;  %v331_v56 = vadd.f32 %v464_v20, %v316_v49 }
  0x1c   : > { %v518_v51 = vpack.c.bf16 %v336_v44, %v335_v43  ;;  %v523_v55 = vpack.c.bf16 %v338_v48, %v337_v47  ;;  %v332_v57 = vadd.f32 %v464_v20, %v317_v50  ;;  %v514_v58 = vunpack.c.h.bf16 %v540_v42 }
  0x1d   : > { %v310_v59 = vmul.f32 %v513_v54, %v618_v1  ;;  %v339_v60 = vmax.f32 %v331_v56, 0.0 }
  0x1e   : > { %519 = vst [vmem:[%s248_s11] sm:$0xff] %v518_v51   ;;  %541 = vst [vmem:[%s248_s11 + $0x8] sm:$0xff] %v523_v55   ;;  %v340_v61 = vmax.f32 %v332_v57, 0.0  ;;  %v311_v62 = vmul.f32 %v514_v58, %v618_v1 }
  0x1f   : > { %v318_v63 = vadd.f32 %v310_v59, %v279_v52 }
  0x20   : > { %v528_v2 = vpack.c.bf16 %v340_v61, %v339_v60  ;;  %v319_v3 = vadd.f32 %v311_v62, %v280_v53 }
  0x21   : > { %v333_v4 = vadd.f32 %v464_v20, %v318_v63 }
  0x22   : > { %542 = vst [vmem:[%s248_s11 + $0x10] sm:$0xff] %v528_v2   ;;  %v334_v5 = vadd.f32 %v464_v20, %v319_v3 }
  0x23   : > { %v341_v0 = vmax.f32 %v333_v4, 0.0 }
  0x24   : > { %v342_v6 = vmax.f32 %v334_v5, 0.0 }
  0x26   : > { %v533_v7 = vpack.c.bf16 %v342_v6, %v341_v0 }
  0x28   : > { %543 = vst [vmem:[%s248_s11 + $0x18] sm:$0xff] %v533_v7  }
  0x29 PF: > { %s15_s18 = sadd.s32 1, %s558_s18  }
  0x2a   : > { %p12_p4 = scmp.ge.s32.totalorder %s15_s18, 4  }
  0x2c   :  { %14 = sbr.rel (!%p12_p4) target bundleno = 1 (0x1), region = 73 }

// kernel: basic_block_forward.6
= control target key start
LH: loop header
LB: loop body
LE: loop exit
PB: predicated region body
PF: predicated region fallthrough
CT: control target
= control target key end

     0   :  { %s843_s12 = smov 0   ;;  %s845_s13 = smov 0   ;;  %s921_s0 = inlined_call_operand.vmem [shape: bf16[128,128], index: 0, kind: input, shape index: {}]   ;;  %s922_s1 = inlined_call_operand.vmem [shape: bf16[128,128], index: 1, kind: input, shape index: {}]   ;;  %s923_s2 = inlined_call_operand.vmem [shape: bf16[128,128], index: 2, kind: output, shape index: {0}]   ;;  %s924_s3 = inlined_call_operand.vmem [shape: f32[2,8,128], index: 3, kind: output, shape index: {1}]  }
   0x1   :  { %s847_s14 = smov 0  }
   0x2 LB: > { %s33_s15 = sadd.s32 1, %s817_s13  ;;  %p652_p0 = scmp.ge.s32.totalorder %s821_s14, 1  ;;  %s821_s14 = sphi %s847_s14, %s14_s14   ;;  %s817_s13 = sphi %s845_s13, %s926_s13   ;;  %s813_s12 = sphi %s843_s12, %s925_s12  }
   0x3   : > { %p35_p1 = scmp.ge.s32.totalorder %s33_s15, 2  ;;  %p185_p2 = scmp.lt.s32.totalorder %s821_s14, 3 }
   0x5   : > { %s928_s15 = smov (%p35_p1, %s33_s15), 0  ;;  %p186_p3 = pnand %p652_p0, %p185_p2 }
   0x6   : > { %v787_v0 = vld [vmem:[%s922_s1] sm:$0xff] (!%p186_p3)   ;;  %s653_s18 = sshll.u32 (!%p186_p3), %s813_s12, 3  ;;  %v788_v1 = vld [vmem:[%s922_s1 + $0x8] sm:$0xff] (!%p186_p3)   ;;  %v789_v2 = vld [vmem:[%s922_s1 + $0x10] sm:$0xff] (!%p186_p3)   ;;  %p257_p5 = scmp.lt.s32.totalorder (!%p186_p3), %s813_s12, 1  ;;  %v500_v49 = vlaneseq (!%p186_p3) }
   0x7   : > { %189 = sbr.rel (%p186_p3) target bundleno = 285 (0x11d), region = 28  ;;  %p231_p4 = scmp.lt.s32.totalorder (!%p186_p3), %s653_s18, 15  ;;  %723 = vmatprep.subr.bf16.mxu0 (!%p186_p3), %v787_v0  ;;  %747 = vmatprep.subr.bf16.mxu1 (!%p186_p3), %v787_v0  ;;  %v790_v3 = vld [vmem:[%s922_s1 + $0x18] sm:$0xff] (!%p186_p3)   ;;  %v791_v6 = vld [vmem:[%s922_s1 + $0x20] sm:$0xff] (!%p186_p3)   ;;  %v792_v7 = vld [vmem:[%s922_s1 + $0x28] sm:$0xff] (!%p186_p3)  }
   0x8   : > { %724 = vmatpush3.bf16.msra.mxu0 (!%p186_p3), %v787_v0  ;;  %755 = vmatpush3.bf16.msra.mxu1 (!%p186_p3), %v787_v0  ;;  %v793_v8 = vld [vmem:[%s922_s1 + $0x30] sm:$0xff] (!%p186_p3)   ;;  %v794_v9 = vld [vmem:[%s922_s1 + $0x38] sm:$0xff] (!%p186_p3)   ;;  %v501_v54 = vshrl.u32 (!%p186_p3), %v500_v49, 7 }
   0x9   : > { %725 = vmatprep.subr.bf16.mxu0 (!%p186_p3), %v788_v1  ;;  %748 = vmatprep.subr.bf16.mxu1 (!%p186_p3), %v788_v1 }
   0xa   : > { %vm503_vm0 = vcmp.eq.s32.totalorder (!%p186_p3), %v501_v54, 1  ;;  %vm502_vm1 = vcmp.eq.s32.totalorder (!%p186_p3), %v501_v54, 0 }
   0xc   : > { %726 = vmatpush3.bf16.msra.mxu0 (!%p186_p3), %v788_v1  ;;  %756 = vmatpush3.bf16.msra.mxu1 (!%p186_p3), %v788_v1 }
   0xd   : > { %727 = vmatprep.subr.bf16.mxu0 (!%p186_p3), %v789_v2  ;;  %749 = vmatprep.subr.bf16.mxu1 (!%p186_p3), %v789_v2 }
   0xe   : > { %s930_s18 = smov (!%p231_p4, %s653_s18), 15  ;;  %s932_s12 = smov (!%p257_p5, %s813_s12), 1 }
   0xf   : > { %s654_s23 = sshll.u32 %s930_s18, 2  ;;  %s657_s17 = sshll.u32 %s932_s12, 3 }
  0x10   : > { %s881_s26 = scalar_lea.vmem %s921_s0, %s654_s23  ;;  %728 = vmatpush3.bf16.msra.mxu0 %v789_v2  ;;  %757 = vmatpush3.bf16.msra.mxu1 %v789_v2  ;;  %s255_s16 = scalar_lea.vmem %s923_s2, %s654_s23 }
  0x11   : > { %v795_v4 = vld [vmem:[%s881_s26] sm:$0xff]   ;;  %v797_v5 = vld [vmem:[%s881_s26 + $0x10] sm:$0xff]   ;;  %729 = vmatprep.subr.bf16.mxu0 %v790_v3  ;;  %750 = vmatprep.subr.bf16.mxu1 %v790_v3  ;;  %v796_v10 = vld [vmem:[%s881_s26 + $0x8] sm:$0xff]   ;;  %s263_s20 = scalar_lea.vmem %s924_s3, %s657_s17 }
  0x12   : > { %739 = vmatprep.mubr.bf16.mxu0 %v795_v4  ;;  %743 = vmatprep.mubr.bf16.mxu1 %v797_v5  ;;  %v798_v11 = vld [vmem:[%s881_s26 + $0x18] sm:$0xff]  }
  0x14   : > { %730 = vmatpush3.bf16.msra.mxu0 %v790_v3  ;;  %758 = vmatpush3.bf16.msra.mxu1 %v790_v3 }
  0x15   : > { %731 = vmatprep.subr.bf16.mxu0 %v791_v6  ;;  %751 = vmatprep.subr.bf16.mxu1 %v791_v6 }
  0x18   : > { %732 = vmatpush3.bf16.msra.mxu0 %v791_v6  ;;  %759 = vmatpush3.bf16.msra.mxu1 %v791_v6 }
  0x19   : > { %733 = vmatprep.subr.bf16.mxu0 %v792_v7  ;;  %752 = vmatprep.subr.bf16.mxu1 %v792_v7 }
  0x1c   : > { %734 = vmatpush3.bf16.msra.mxu0 %v792_v7  ;;  %760 = vmatpush3.bf16.msra.mxu1 %v792_v7 }
  0x1d   : > { %735 = vmatprep.subr.bf16.mxu0 %v793_v8  ;;  %753 = vmatprep.subr.bf16.mxu1 %v793_v8 }
  0x20   : > { %736 = vmatpush3.bf16.msra.mxu0 %v793_v8  ;;  %761 = vmatpush3.bf16.msra.mxu1 %v793_v8 }
  0x21   : > { %737 = vmatprep.subr.bf16.mxu0 %v794_v9  ;;  %754 = vmatprep.subr.bf16.mxu1 %v794_v9 }
  0x24   : > { %738 = vmatpush3.bf16.msra.mxu0 %v794_v9  ;;  %762 = vmatpush3.bf16.msra.mxu1 %v794_v9 }
  0x27   : > { %740 = vmatmul.mubr.bf16.vlgmr.msra.gmra.mrb[0].mxu0 %v796_v10  ;;  %744 = vmatmul.mubr.bf16.vlgmr.msra.gmra.mrb[0].mxu1 %v798_v11 }
  0xfa   : > { %v741_v12 = vpop.f32.mrb[0].mxu0  ;;  %v745_v13 = vpop.f32.mrb[0].mxu1 }
  0xfb   : > { %v395_v14 = vpop.f32.mrb[1].mxu0  ;;  %v411_v15 = vpop.f32.mrb[1].mxu1  ;;  %v481_v27 = vmul.f32 %v741_v12, %v741_v12  ;;  %v485_v39 = vmul.f32 %v745_v13, %v745_v13 }
  0xfc   : > { %v742_v16 = vpop.f32.mrb[2].mxu0  ;;  %v746_v17 = vpop.f32.mrb[2].mxu1  ;;  %v479_v18 = vmul.f32 %v395_v14, %v395_v14  ;;  %v483_v33 = vmul.f32 %v411_v15, %v411_v15 }
  0xfd   : > { %v696_v19 = vpack.c.bf16 %v742_v16, %v741_v12  ;;  %v398_v20 = vpop.f32.mrb[3].mxu0  ;;  %v706_v21 = vpack.c.bf16 %v746_v17, %v745_v13  ;;  %v414_v22 = vpop.f32.mrb[3].mxu1  ;;  %v482_v30 = vmul.f32 %v742_v16, %v742_v16  ;;  %v486_v42 = vmul.f32 %v746_v17, %v746_v17 }
  0xfe   : > { %v691_v23 = vpack.c.bf16 %v398_v20, %v395_v14  ;;  %v466_v24 = vadd.f32 %v398_v20, %v395_v14  ;;  %v480_v25 = vmul.f32 %v398_v20, %v398_v20  ;;  %v701_v26 = vpack.c.bf16 %v414_v22, %v411_v15 }
  0xff   : > { %708 = vst [vmem:[%s255_s16 + $0x8] sm:$0xff] %v696_v19   ;;  %710 = vst [vmem:[%s255_s16 + $0x18] sm:$0xff] %v706_v21   ;;  %v484_v38 = vmul.f32 %v414_v22, %v414_v22 }
 0x100   : > { %692 = vst [vmem:[%s255_s16] sm:$0xff] %v691_v23   ;;  %v467_v28 = vadd.f32 %v741_v12, %v466_v24  ;;  %v487_v29 = vadd.f32 %v480_v25, %v479_v18  ;;  %709 = vst [vmem:[%s255_s16 + $0x10] sm:$0xff] %v701_v26  }
 0x102   : > { %v488_v31 = vadd.f32 %v487_v29, %v481_v27  ;;  %v468_v32 = vadd.f32 %v742_v16, %v467_v28 }
 0x104   : > { %v469_v34 = vadd.f32 %v468_v32, %v411_v15  ;;  %v489_v35 = vadd.f32 %v488_v31, %v482_v30 }
 0x106   : > { %v490_v36 = vadd.f32 %v489_v35, %v483_v33  ;;  %v470_v37 = vadd.f32 %v469_v34, %v414_v22 }
 0x108   : > { %v471_v40 = vadd.f32 %v745_v13, %v470_v37  ;;  %v491_v41 = vadd.f32 %v490_v36, %v484_v38 }
 0x10a   : > { %v472_v43 = vadd.f32 %v746_v17, %v471_v40  ;;  %v492_v44 = vadd.f32 %v491_v41, %v485_v39 }
 0x10c   : > { %v473_v45 = vrot.slane %v472_v43, 4  ;;  %v493_v46 = vadd.f32 %v492_v44, %v486_v42 }
 0x10e   : > { %v474_v47 = vadd.f32 %v473_v45, %v472_v43  ;;  %v494_v48 = vrot.slane %v493_v46, 4 }
 0x110   : > { %v475_v50 = vrot.slane %v474_v47, 2  ;;  %v495_v51 = vadd.f32 %v494_v48, %v493_v46 }
 0x112   : > { %v476_v52 = vadd.f32 %v475_v50, %v474_v47  ;;  %v496_v53 = vrot.slane %v495_v51, 2 }
 0x114   : > { %v497_v55 = vadd.f32 %v496_v53, %v495_v51  ;;  %v477_v56 = vrot.slane %v476_v52, 1 }
 0x116   : > { %v498_v57 = vrot.slane %v497_v55, 1  ;;  %v478_v59 = vadd.f32 %v477_v56, %v476_v52 }
 0x118   : > { %v499_v58 = vadd.f32 %v498_v57, %v497_v55 }
 0x11a   : > { %v504_v60 = vsel %vm503_vm0, %v499_v58, 0.0 }
 0x11b   : > { %v505_v61 = vsel %vm502_vm1, %v478_v59, %v504_v60 }
 0x11c   : > { %506 = vst [vmem:[%s263_s20] sm:$0xff] %v505_v61 }
 0x11d PF: > { %s14_s14 = sadd.s32 1, %s821_s14   ;;  %s925_s12 = smov %s817_s13 }
 0x11e   : > { %p11_p6 = scmp.ge.s32.totalorder %s14_s14, 4   ;;  %s926_s13 = smov %s928_s15 }
 0x120   :  { %13 = sbr.rel (!%p11_p6) target bundleno = 2 (0x2), region = 73 }

// kernel: basic_block_forward.5
= control target key start
LH: loop header
LB: loop body
LE: loop exit
PB: predicated region body
PF: predicated region fallthrough
CT: control target
= control target key end

     0   :  { %s2467_s18 = smov 0   ;;  %s2469_s19 = smov 0   ;;  %s2999_s0 = inlined_call_operand.vmem [shape: bf16[128,1152], index: 0, kind: input, shape index: {}]   ;;  %s3000_s1 = inlined_call_operand.vmem [shape: f32[1,1152], index: 1, kind: input, shape index: {}]   ;;  %s3001_s2 = inlined_call_operand.vmem [shape: f32[1,1152], index: 2, kind: input, shape index: {}]   ;;  %s3002_s3 = inlined_call_operand.vmem [shape: bf16[1152,128], index: 3, kind: input, shape index: {}]   ;;  %s3003_s4 = inlined_call_operand.vmem [shape: bf16[128,128], index: 4, kind: output, shape index: {0}]   ;;  %s3004_s5 = inlined_call_operand.vmem [shape: f32[2,8,128], index: 5, kind: output, shape index: {1}]  }
   0x1   :  { %s2471_s20 = smov 0  }
   0x2 LB: > { %s35_s21 = sadd.s32 1, %s2431_s19  ;;  %p1983_p0 = scmp.ge.s32.totalorder %s2435_s20, 1  ;;  %s2435_s20 = sphi %s2471_s20, %s16_s20   ;;  %s2431_s19 = sphi %s2469_s19, %s3006_s19   ;;  %s2427_s18 = sphi %s2467_s18, %s3005_s18  }
   0x3   : > { %p37_p1 = scmp.ge.s32.totalorder %s35_s21, 2  ;;  %p258_p2 = scmp.lt.s32.totalorder %s2435_s20, 3 }
   0x5   : > { %s3008_s21 = smov (%p37_p1, %s35_s21), 0  ;;  %p259_p3 = pnand %p1983_p0, %p258_p2 }
   0x6   : > { %v2341_v0 = vld [vmem:[%s3002_s3 + $0x40] sm:$0xff] (!%p259_p3)   ;;  %v2345_v4 = vld [vmem:[%s3002_s3 + $0x48] sm:$0xff] (!%p259_p3)   ;;  %v2349_v8 = vld [vmem:[%s3002_s3 + $0x50] sm:$0xff] (!%p259_p3)   ;;  %s1984_s6 = sshll.u32 (!%p259_p3), %s2427_s18, 3  ;;  %v481_v21 = vlaneseq (!%p259_p3)  ;;  %p357_p5 = scmp.lt.s32.totalorder (!%p259_p3), %s2427_s18, 1 }
   0x7   : > { %262 = sbr.rel (%p259_p3) target bundleno = 359 (0x167), region = 36  ;;  %v2342_v1 = vld [vmem:[%s3002_s3 + $0xc0] sm:$0xff] (!%p259_p3)   ;;  %2104 = vmatprep.subr.bf16.mxu0 (!%p259_p3), %v2341_v0  ;;  %v2346_v5 = vld [vmem:[%s3002_s3 + $0xc8] sm:$0xff] (!%p259_p3)   ;;  %v2350_v9 = vld [vmem:[%s3002_s3 + $0xd0] sm:$0xff] (!%p259_p3)   ;;  %p319_p4 = scmp.lt.s32.totalorder (!%p259_p3), %s1984_s6, 15 }
   0x8   : > { %v2343_v2 = vld [vmem:[%s3002_s3] sm:$0xff] (!%p259_p3)   ;;  %2144 = vmatprep.subr.bf16.mxu1 (!%p259_p3), %v2342_v1  ;;  %v2347_v6 = vld [vmem:[%s3002_s3 + $0x8] sm:$0xff] (!%p259_p3)   ;;  %v2351_v10 = vld [vmem:[%s3002_s3 + $0x10] sm:$0xff] (!%p259_p3)   ;;  %v2565_v26 = vshrl.u32 (!%p259_p3), %v481_v21, 7 }
   0x9   : > { %v2344_v3 = vld [vmem:[%s3002_s3 + $0x80] sm:$0xff] (!%p259_p3)   ;;  %2105 = vmatpush3.bf16.msra.mxu0 (!%p259_p3), %v2343_v2  ;;  %v2348_v7 = vld [vmem:[%s3002_s3 + $0x88] sm:$0xff] (!%p259_p3)   ;;  %v2352_v11 = vld [vmem:[%s3002_s3 + $0x90] sm:$0xff] (!%p259_p3)  }
   0xa   : > { %2145 = vmatpush3.bf16.msra.mxu1 (!%p259_p3), %v2344_v3  ;;  %2106 = vmatprep.subr.bf16.mxu0 (!%p259_p3), %v2345_v4  ;;  %v2353_v12 = vld [vmem:[%s3002_s3 + $0x58] sm:$0xff] (!%p259_p3)   ;;  %v2357_v16 = vld [vmem:[%s3002_s3 + $0x60] sm:$0xff] (!%p259_p3)   ;;  %v2361_v20 = vld [vmem:[%s3002_s3 + $0x68] sm:$0xff] (!%p259_p3)   ;;  %v487_v32 = vsub.s32 (!%p259_p3), 1, %v2565_v26  ;;  %v495_v34 = vsub.s32 (!%p259_p3), 3, %v2565_v26  ;;  %v483_v36 = vsub.s32 (!%p259_p3), 0, %v2565_v26 }
   0xb   : > { %2146 = vmatprep.subr.bf16.mxu1 (!%p259_p3), %v2346_v5  ;;  %v2354_v13 = vld [vmem:[%s3002_s3 + $0xd8] sm:$0xff] (!%p259_p3)   ;;  %v2358_v17 = vld [vmem:[%s3002_s3 + $0xe0] sm:$0xff] (!%p259_p3)   ;;  %v2362_v22 = vld [vmem:[%s3002_s3 + $0xe8] sm:$0xff] (!%p259_p3)   ;;  %v491_v40 = vsub.s32 (!%p259_p3), 2, %v2565_v26  ;;  %v499_v41 = vsub.s32 (!%p259_p3), 4, %v2565_v26  ;;  %v503_v42 = vsub.s32 (!%p259_p3), 5, %v2565_v26 }
   0xc   : > { %v2355_v14 = vld [vmem:[%s3002_s3 + $0x18] sm:$0xff] (!%p259_p3)   ;;  %v2359_v18 = vld [vmem:[%s3002_s3 + $0x20] sm:$0xff] (!%p259_p3)   ;;  %v2363_v23 = vld [vmem:[%s3002_s3 + $0x28] sm:$0xff] (!%p259_p3)   ;;  %vm1805_vm0 = vcmp.eq.s32.totalorder (!%p259_p3), %v2565_v26, 1  ;;  %vm1804_vm1 = vcmp.eq.s32.totalorder (!%p259_p3), %v2565_v26, 0 }
   0xd   : > { %2107 = vmatpush3.bf16.msra.mxu0 (!%p259_p3), %v2347_v6  ;;  %v2356_v15 = vld [vmem:[%s3002_s3 + $0x98] sm:$0xff] (!%p259_p3)   ;;  %v2360_v19 = vld [vmem:[%s3002_s3 + $0xa0] sm:$0xff] (!%p259_p3)   ;;  %v2364_v24 = vld [vmem:[%s3002_s3 + $0xa8] sm:$0xff] (!%p259_p3)  }
   0xe   : > { %2147 = vmatpush3.bf16.msra.mxu1 %v2348_v7  ;;  %2108 = vmatprep.subr.bf16.mxu0 %v2349_v8  ;;  %s3010_s6 = smov (!%p319_p4, %s1984_s6), 15  ;;  %v2365_v25 = vld [vmem:[%s3002_s3 + $0x70] sm:$0xff]   ;;  %v2369_v30 = vld [vmem:[%s3002_s3 + $0x78] sm:$0xff]   ;;  %v2602_v39 = vld [vmem:[%s3000_s1] sm:$0xff]  ;;  %s3012_s18 = smov (!%p357_p5, %s2427_s18), 1 }
   0xf   : > { %2148 = vmatprep.subr.bf16.mxu1 %v2350_v9  ;;  %v2366_v27 = vld [vmem:[%s3002_s3 + $0xf0] sm:$0xff]   ;;  %s2316_s9 = smul.u32 36, %s3010_s6  ;;  %v2370_v31 = vld [vmem:[%s3002_s3 + $0xf8] sm:$0xff]   ;;  %v2610_v47 = vld [vmem:[%s3001_s2] sm:$0xff]  ;;  %v2615_v50 = vrot.slane %v2602_v39, %v487_v32  ;;  %v2624_v57 = vrot.slane %v2602_v39, %v495_v34  ;;  %v2635_v62 = vrot.slane %v2602_v39, %v483_v36  ;;  %v2643_v2 = vrot.slane %v2602_v39, %v491_v40 }
  0x10   : > { %v2367_v28 = vld [vmem:[%s3002_s3 + $0x30] sm:$0xff]   ;;  %v2371_v33 = vld [vmem:[%s3002_s3 + $0x38] sm:$0xff]   ;;  %v2618_v51 = vrot.slane %v2610_v47, %v487_v32  ;;  %v2373_v54 = vld [vmem:[%s3002_s3 + $0x140] sm:$0xff]   ;;  %v2627_v58 = vrot.slane %v2610_v47, %v495_v34  ;;  %v2638_v63 = vrot.slane %v2610_v47, %v483_v36  ;;  %v2646_v3 = vrot.slane %v2610_v47, %v491_v40 }
  0x11   : > { %2109 = vmatpush3.bf16.msra.mxu0 %v2351_v10  ;;  %v2368_v29 = vld [vmem:[%s3002_s3 + $0xb0] sm:$0xff]   ;;  %s2586_s24 = scalar_lea.vmem %s2999_s0, %s2316_s9  ;;  %v2372_v35 = vld [vmem:[%s3002_s3 + $0xb8] sm:$0xff]   ;;  %v2374_v59 = vld [vmem:[%s3002_s3 + $0x1c0] sm:$0xff]  }
  0x12   : > { %2149 = vmatpush3.bf16.msra.mxu1 %v2352_v11  ;;  %2110 = vmatprep.subr.bf16.mxu0 %v2353_v12  ;;  %v365_v37 = vld [vmem:[%s2586_s24] sm:$0xff]  ;;  %v366_v48 = vld [vmem:[%s2586_s24 + $0x8] sm:$0xff]  ;;  %v381_v34 = vld [vmem:[%s2586_s24 + $0x74] sm:$0xff] }
  0x13   : > { %2150 = vmatprep.subr.bf16.mxu1 %v2354_v13  ;;  %v370_v38 = vld [vmem:[%s2586_s24 + $0x24] sm:$0xff]  ;;  %v405_v43 = vunpack.c.l.bf16 %v365_v37  ;;  %v406_v44 = vunpack.c.h.bf16 %v365_v37  ;;  %v371_v49 = vld [vmem:[%s2586_s24 + $0x2c] sm:$0xff]  ;;  %v407_v52 = vunpack.c.l.bf16 %v366_v48  ;;  %v408_v53 = vunpack.c.h.bf16 %v366_v48 }
  0x14   : > { %v414_v45 = vunpack.c.l.bf16 %v370_v38  ;;  %v415_v46 = vunpack.c.h.bf16 %v370_v38  ;;  %v416_v55 = vunpack.c.l.bf16 %v371_v49  ;;  %v417_v56 = vunpack.c.h.bf16 %v371_v49  ;;  %v2377_v36 = vld [vmem:[%s3002_s3 + $0x148] sm:$0xff]  }
  0x15   : > { %2111 = vmatpush3.bf16.msra.mxu0 %v2355_v14  ;;  %v527_v60 = vmul.f32 %v2615_v50, %v406_v44  ;;  %v529_v0 = vmul.f32 %v2624_v57, %v408_v53  ;;  %v526_v6 = vmul.f32 %v2635_v62, %v405_v43  ;;  %v528_v10 = vmul.f32 %v2643_v2, %v407_v52  ;;  %v2378_v44 = vld [vmem:[%s3002_s3 + $0x1c8] sm:$0xff]  }
  0x16   : > { %2151 = vmatpush3.bf16.msra.mxu1 %v2356_v15  ;;  %2112 = vmatprep.subr.bf16.mxu0 %v2357_v16  ;;  %v536_v61 = vmul.f32 %v2615_v50, %v415_v46  ;;  %v538_v1 = vmul.f32 %v2624_v57, %v417_v56  ;;  %v535_v7 = vmul.f32 %v2635_v62, %v414_v45  ;;  %v435_v40 = vunpack.c.h.bf16 %v381_v34  ;;  %v2379_v49 = vld [vmem:[%s3002_s3 + $0x108] sm:$0xff]  }
  0x17   : > { %2152 = vmatprep.subr.bf16.mxu1 %v2358_v17  ;;  %v648_v4 = vadd.f32 %v2618_v51, %v527_v60  ;;  %v650_v8 = vadd.f32 %v2627_v58, %v529_v0  ;;  %v537_v11 = vmul.f32 %v2643_v2, %v416_v55  ;;  %v647_v14 = vadd.f32 %v2638_v63, %v526_v6  ;;  %v2380_v56 = vld [vmem:[%s3002_s3 + $0x188] sm:$0xff]   ;;  %v2381_v6 = vld [vmem:[%s3002_s3 + $0x150] sm:$0xff]  }
  0x18   : > { %v657_v5 = vadd.f32 %v2618_v51, %v536_v61  ;;  %v659_v9 = vadd.f32 %v2627_v58, %v538_v1  ;;  %v656_v15 = vadd.f32 %v2638_v63, %v535_v7  ;;  %v434_v0 = vunpack.c.l.bf16 %v381_v34 }
  0x19   : > { %2113 = vmatpush3.bf16.msra.mxu0 %v2359_v18  ;;  %v720_v12 = vmax.f32 %v648_v4, 0.0  ;;  %v722_v16 = vmax.f32 %v650_v8, 0.0  ;;  %v649_v18 = vadd.f32 %v2646_v3, %v528_v10 }
  0x1a   : > { %2153 = vmatpush3.bf16.msra.mxu1 %v2360_v19  ;;  %2114 = vmatprep.subr.bf16.mxu0 %v2361_v20  ;;  %v729_v13 = vmax.f32 %v657_v5, 0.0  ;;  %v731_v17 = vmax.f32 %v659_v9, 0.0  ;;  %v658_v19 = vadd.f32 %v2646_v3, %v537_v11  ;;  %v2375_v20 = vld [vmem:[%s3002_s3 + $0x100] sm:$0xff]   ;;  %v2382_v11 = vld [vmem:[%s3002_s3 + $0x1d0] sm:$0xff]  }
  0x1b   : > { %2154 = vmatprep.subr.bf16.mxu1 %v2362_v22  ;;  %v719_v22 = vmax.f32 %v647_v14, 0.0 }
  0x1c   : > { %v792_v21 = vpack.c.bf16 %v729_v13, %v720_v12 }
  0x1d   : > { %2115 = vmatpush3.bf16.msra.mxu0 %v2363_v23  ;;  %v728_v23 = vmax.f32 %v656_v15, 0.0  ;;  %v555_v15 = vmul.f32 %v2643_v2, %v434_v0 }
  0x1e   : > { %2155 = vmatpush3.bf16.msra.mxu1 %v2364_v24  ;;  %2116 = vmatprep.subr.bf16.mxu0 %v2365_v25  ;;  %v2376_v24 = vld [vmem:[%s3002_s3 + $0x180] sm:$0xff]   ;;  %v375_v25 = vld [vmem:[%s2586_s24 + $0x48] sm:$0xff] }
  0x1f   : > { %2156 = vmatprep.subr.bf16.mxu1 %v2366_v27  ;;  %v380_v27 = vld [vmem:[%s2586_s24 + $0x6c] sm:$0xff]  ;;  %v424_v32 = vunpack.c.h.bf16 %v375_v25  ;;  %1435 = vmatprep.mubr.bf16.mxu0 %v792_v21  ;;  %v423_v46 = vunpack.c.l.bf16 %v375_v25  ;;  %v2385_v21 = vld [vmem:[%s3002_s3 + $0x158] sm:$0xff]   ;;  %v676_v25 = vadd.f32 %v2646_v3, %v555_v15  ;;  %v2392_v15 = vld [vmem:[%s3002_s3 + $0x1a0] sm:$0xff]  }
  0x20   : > { %v433_v37 = vunpack.c.h.bf16 %v380_v27  ;;  %v432_v48 = vunpack.c.l.bf16 %v380_v27  ;;  %v2386_v27 = vld [vmem:[%s3002_s3 + $0x1d8] sm:$0xff]  }
  0x21   : > { %2117 = vmatpush3.bf16.msra.mxu0 %v2367_v28  ;;  %v2671_v28 = vrot.slane %v2602_v39, %v499_v41  ;;  %v545_v45 = vmul.f32 %v2615_v50, %v424_v32  ;;  %v544_v60 = vmul.f32 %v2635_v62, %v423_v46  ;;  %v2388_v46 = vld [vmem:[%s3002_s3 + $0x198] sm:$0xff]  }
  0x22   : > { %2157 = vmatpush3.bf16.msra.mxu1 %v2368_v29  ;;  %2118 = vmatprep.subr.bf16.mxu0 %v2369_v30  ;;  %v794_v29 = vpack.c.bf16 %v731_v17, %v722_v16  ;;  %v721_v30 = vmax.f32 %v649_v18, 0.0  ;;  %v554_v52 = vmul.f32 %v2615_v50, %v433_v37  ;;  %v553_v61 = vmul.f32 %v2635_v62, %v432_v48  ;;  %v2383_v16 = vld [vmem:[%s3002_s3 + $0x110] sm:$0xff]   ;;  %v391_v37 = vld [vmem:[%s2586_s24 + $0xbc] sm:$0xff] }
  0x23   : > { %2158 = vmatprep.subr.bf16.mxu1 %v2370_v31  ;;  %v730_v31 = vmax.f32 %v658_v19, 0.0  ;;  %v665_v8 = vadd.f32 %v2638_v63, %v544_v60  ;;  %v2384_v17 = vld [vmem:[%s3002_s3 + $0x190] sm:$0xff]   ;;  %v2389_v60 = vld [vmem:[%s3002_s3 + $0x160] sm:$0xff]  }
  0x24   : > { %1500 = vmatprep.mubr.bf16.mxu1 %v794_v29  ;;  %v675_v1 = vadd.f32 %v2618_v51, %v554_v52  ;;  %v674_v9 = vadd.f32 %v2638_v63, %v553_v61  ;;  %v385_v29 = vld [vmem:[%s2586_s24 + $0x90] sm:$0xff] }
  0x25   : > { %2119 = vmatpush3.bf16.msra.mxu0 %v2371_v33  ;;  %v376_v33 = vld [vmem:[%s2586_s24 + $0x50] sm:$0xff]  ;;  %v793_v43 = vpack.c.bf16 %v730_v31, %v721_v30  ;;  %v737_v18 = vmax.f32 %v665_v8, 0.0  ;;  %v507_v31 = vsub.s32 6, %v2565_v26  ;;  %v442_v34 = vunpack.c.h.bf16 %v385_v29 }
  0x26   : > { %2159 = vmatpush3.bf16.msra.mxu1 %v2372_v35  ;;  %2184 = vmatprep.subr.bf16.mxu0 %v2373_v54  ;;  %v791_v35 = vpack.c.bf16 %v728_v23, %v719_v22  ;;  %v426_v38 = vunpack.c.h.bf16 %v376_v33  ;;  %v556_v54 = vmul.f32 %v2624_v57, %v435_v40  ;;  %v425_v55 = vunpack.c.l.bf16 %v376_v33  ;;  %v390_v30 = vld [vmem:[%s2586_s24 + $0xb4] sm:$0xff] }
  0x27   : > { %2224 = vmatprep.subr.bf16.mxu1 %v2374_v59  ;;  %v666_v59 = vadd.f32 %v2618_v51, %v545_v45  ;;  %v747_v12 = vmax.f32 %v675_v1, 0.0  ;;  %v746_v19 = vmax.f32 %v674_v9, 0.0  ;;  %v2720_v22 = vrot.slane %v2602_v39, %v503_v42  ;;  %v2387_v40 = vld [vmem:[%s3002_s3 + $0x118] sm:$0xff]  }
  0x28   : > { %1436 = vmatmul.mubr.bf16.vlgmr.msra.gmra.mrb[0].mxu0 %v791_v35  ;;  %v547_v53 = vmul.f32 %v2624_v57, %v426_v38  ;;  %v677_v5 = vadd.f32 %v2627_v58, %v556_v54  ;;  %v546_v10 = vmul.f32 %v2643_v2, %v425_v55  ;;  %v451_v35 = vunpack.c.h.bf16 %v390_v30 }
  0x29   : > { %1501 = vmatmul.mubr.bf16.vlgmr.msra.gmra.mrb[0].mxu1 %v793_v43  ;;  %2185 = vmatpush3.bf16.msra.mxu0 %v2375_v20  ;;  %v738_v7 = vmax.f32 %v666_v59, 0.0  ;;  %v800_v32 = vpack.c.bf16 %v746_v19, %v737_v18  ;;  %v748_v38 = vmax.f32 %v676_v25, 0.0  ;;  %v441_v45 = vunpack.c.l.bf16 %v385_v29  ;;  %v2394_v25 = vld [vmem:[%s3002_s3 + $0x1e8] sm:$0xff]  }
  0x2a   : > { %2225 = vmatpush3.bf16.msra.mxu1 %v2376_v24  ;;  %2186 = vmatprep.subr.bf16.mxu0 %v2377_v36  ;;  %v668_v4 = vadd.f32 %v2627_v58, %v547_v53  ;;  %v749_v14 = vmax.f32 %v677_v5, 0.0  ;;  %v667_v20 = vadd.f32 %v2646_v3, %v546_v10  ;;  %v386_v36 = vld [vmem:[%s2586_s24 + $0x98] sm:$0xff]  ;;  %v563_v48 = vmul.f32 %v2615_v50, %v442_v34  ;;  %v2391_v10 = vld [vmem:[%s3002_s3 + $0x120] sm:$0xff]  }
  0x2b   : > { %2226 = vmatprep.subr.bf16.mxu1 %v2378_v44  ;;  %v801_v23 = vpack.c.bf16 %v747_v12, %v738_v7  ;;  %v444_v43 = vunpack.c.h.bf16 %v386_v36  ;;  %v453_v44 = vunpack.c.h.bf16 %v391_v37  ;;  %v450_v52 = vunpack.c.l.bf16 %v390_v30  ;;  %v395_v34 = vld [vmem:[%s2586_s24 + $0xd8] sm:$0xff] }
  0x2c   : > { %v740_v13 = vmax.f32 %v668_v4, 0.0  ;;  %v739_v33 = vmax.f32 %v667_v20, 0.0  ;;  %v443_v53 = vunpack.c.l.bf16 %v386_v36  ;;  %v452_v59 = vunpack.c.l.bf16 %v391_v37  ;;  %v2390_v4 = vld [vmem:[%s3002_s3 + $0x1e0] sm:$0xff]  }
  0x2d   : > { %2187 = vmatpush3.bf16.msra.mxu0 %v2379_v49  ;;  %1443 = vmatprep.mubr.bf16.mxu0 %v801_v23  ;;  %v572_v49 = vmul.f32 %v2615_v50, %v451_v35  ;;  %v565_v55 = vmul.f32 %v2624_v57, %v444_v43  ;;  %v684_v61 = vadd.f32 %v2618_v51, %v563_v48  ;;  %v511_v5 = vsub.s32 7, %v2565_v26  ;;  %v400_v35 = vld [vmem:[%s2586_s24 + $0xfc] sm:$0xff]  ;;  %v401_v43 = vld [vmem:[%s2586_s24 + $0x104] sm:$0xff] }
  0x2e   : > { %2227 = vmatpush3.bf16.msra.mxu1 %v2380_v56  ;;  %v803_v24 = vpack.c.bf16 %v749_v14, %v740_v13  ;;  %2188 = vmatprep.subr.bf16.mxu0 %v2381_v6  ;;  %v802_v54 = vpack.c.bf16 %v748_v38, %v739_v33  ;;  %v574_v56 = vmul.f32 %v2624_v57, %v453_v44  ;;  %v2395_v33 = vld [vmem:[%s3002_s3 + $0x128] sm:$0xff]   ;;  %v396_v36 = vld [vmem:[%s2586_s24 + $0xe0] sm:$0xff]  ;;  %v471_v48 = vunpack.c.h.bf16 %v401_v43 }
  0x2f   : > { %2228 = vmatprep.subr.bf16.mxu1 %v2382_v11  ;;  %v693_v0 = vadd.f32 %v2618_v51, %v572_v49  ;;  %v562_v1 = vmul.f32 %v2635_v62, %v441_v45  ;;  %v686_v6 = vadd.f32 %v2627_v58, %v565_v55  ;;  %v571_v8 = vmul.f32 %v2635_v62, %v450_v52 }
  0x30   : > { %1508 = vmatprep.mubr.bf16.mxu1 %v803_v24  ;;  %1444 = vmatmul.mubr.bf16.gmra.mrb[4].mxu0 %v800_v32  ;;  %v695_v7 = vadd.f32 %v2627_v58, %v574_v56  ;;  %v564_v9 = vmul.f32 %v2643_v2, %v443_v53  ;;  %v756_v11 = vmax.f32 %v684_v61, 0.0  ;;  %v573_v14 = vmul.f32 %v2643_v2, %v452_v59  ;;  %v2397_v59 = vld [vmem:[%s3002_s3 + $0x170] sm:$0xff]  }
  0x31   : > { %2189 = vmatpush3.bf16.msra.mxu0 %v2383_v16  ;;  %1509 = vmatmul.mubr.bf16.gmra.mrb[4].mxu1 %v802_v54  ;;  %v765_v12 = vmax.f32 %v693_v0, 0.0  ;;  %v683_v13 = vadd.f32 %v2638_v63, %v562_v1  ;;  %v2393_v16 = vld [vmem:[%s3002_s3 + $0x168] sm:$0xff]   ;;  %v692_v19 = vadd.f32 %v2638_v63, %v571_v8  ;;  %v2786_v37 = vrot.slane %v2602_v39, %v507_v31 }
  0x32   : > { %2229 = vmatpush3.bf16.msra.mxu1 %v2384_v17  ;;  %2190 = vmatprep.subr.bf16.mxu0 %v2385_v21  ;;  %v758_v17 = vmax.f32 %v686_v6, 0.0  ;;  %v767_v18 = vmax.f32 %v695_v7, 0.0  ;;  %v685_v20 = vadd.f32 %v2646_v3, %v564_v9  ;;  %v694_v24 = vadd.f32 %v2646_v3, %v573_v14 }
  0x33   : > { %2230 = vmatprep.subr.bf16.mxu1 %v2386_v27  ;;  %v810_v21 = vpack.c.bf16 %v765_v12, %v756_v11  ;;  %v755_v23 = vmax.f32 %v683_v13, 0.0  ;;  %v2775_v27 = vrot.slane %v2610_v47, %v503_v42  ;;  %v764_v30 = vmax.f32 %v692_v19, 0.0 }
  0x34   : > { %v812_v29 = vpack.c.bf16 %v767_v18, %v758_v17  ;;  %v757_v32 = vmax.f32 %v685_v20, 0.0  ;;  %v766_v38 = vmax.f32 %v694_v24, 0.0  ;;  %v469_v42 = vunpack.c.h.bf16 %v400_v35  ;;  %v2404_v24 = vld [vmem:[%s3002_s3 + $0x1b8] sm:$0xff]  }
  0x35   : > { %2191 = vmatpush3.bf16.msra.mxu0 %v2387_v40  ;;  %1451 = vmatprep.mubr.bf16.mxu0 %v810_v21  ;;  %v460_v40 = vunpack.c.h.bf16 %v395_v34  ;;  %v462_v44 = vunpack.c.h.bf16 %v396_v36  ;;  %v809_v45 = vpack.c.bf16 %v764_v30, %v755_v23  ;;  %v459_v49 = vunpack.c.l.bf16 %v395_v34  ;;  %v367_v30 = vld [vmem:[%s2586_s24 + $0x10] sm:$0xff] }
  0x36   : > { %2231 = vmatpush3.bf16.msra.mxu1 %v2388_v46  ;;  %2192 = vmatprep.subr.bf16.mxu0 %v2389_v60  ;;  %v2396_v46 = vld [vmem:[%s3002_s3 + $0x1a8] sm:$0xff]   ;;  %v468_v52 = vunpack.c.l.bf16 %v400_v35  ;;  %v811_v53 = vpack.c.bf16 %v766_v38, %v757_v32  ;;  %v590_v55 = vmul.f32 %v2615_v50, %v469_v42  ;;  %v461_v56 = vunpack.c.l.bf16 %v396_v36  ;;  %v372_v32 = vld [vmem:[%s2586_s24 + $0x34] sm:$0xff]  ;;  %v373_v42 = vld [vmem:[%s2586_s24 + $0x3c] sm:$0xff] }
  0x37   : > { %2232 = vmatprep.subr.bf16.mxu1 %v2390_v4  ;;  %1516 = vmatprep.mubr.bf16.mxu1 %v812_v29  ;;  %v581_v54 = vmul.f32 %v2615_v50, %v460_v40  ;;  %v583_v60 = vmul.f32 %v2624_v57, %v462_v44  ;;  %v592_v61 = vmul.f32 %v2624_v57, %v471_v48  ;;  %v470_v1 = vunpack.c.l.bf16 %v401_v43  ;;  %v2398_v4 = vld [vmem:[%s3002_s3 + $0x1f0] sm:$0xff]  }
  0x38   : > { %1452 = vmatmul.mubr.bf16.gmra.mrb[8].mxu0 %v809_v45  ;;  %v580_v0 = vmul.f32 %v2635_v62, %v459_v49  ;;  %v711_v6 = vadd.f32 %v2618_v51, %v590_v55  ;;  %v589_v7 = vmul.f32 %v2635_v62, %v468_v52  ;;  %v582_v8 = vmul.f32 %v2643_v2, %v461_v56  ;;  %v2399_v57 = vld [vmem:[%s3002_s3 + $0x130] sm:$0xff]  }
  0x39   : > { %2193 = vmatpush3.bf16.msra.mxu0 %v2391_v10  ;;  %1517 = vmatmul.mubr.bf16.gmra.mrb[8].mxu1 %v811_v53  ;;  %v702_v50 = vadd.f32 %v2618_v51, %v581_v54  ;;  %v704_v9 = vadd.f32 %v2627_v58, %v583_v60  ;;  %v713_v10 = vadd.f32 %v2627_v58, %v592_v61  ;;  %v2400_v51 = vld [vmem:[%s3002_s3 + $0x1b0] sm:$0xff]   ;;  %v2401_v58 = vld [vmem:[%s3002_s3 + $0x178] sm:$0xff]   ;;  %v410_v38 = vunpack.c.h.bf16 %v367_v30 }
  0x3a   : > { %2233 = vmatpush3.bf16.msra.mxu1 %v2392_v15  ;;  %2194 = vmatprep.subr.bf16.mxu0 %v2393_v16  ;;  %v701_v11 = vadd.f32 %v2638_v63, %v580_v0  ;;  %v591_v12 = vmul.f32 %v2643_v2, %v470_v1  ;;  %v783_v13 = vmax.f32 %v711_v6, 0.0  ;;  %v710_v14 = vadd.f32 %v2638_v63, %v589_v7  ;;  %v2402_v2 = vld [vmem:[%s3002_s3 + $0x1f8] sm:$0xff]  }
  0x3b   : > { %2234 = vmatprep.subr.bf16.mxu1 %v2394_v25  ;;  %v774_v62 = vmax.f32 %v702_v50, 0.0  ;;  %v703_v15 = vadd.f32 %v2646_v3, %v582_v8  ;;  %v776_v16 = vmax.f32 %v704_v9, 0.0  ;;  %v785_v17 = vmax.f32 %v713_v10, 0.0  ;;  %v2403_v63 = vld [vmem:[%s3002_s3 + $0x138] sm:$0xff]  }
  0x3c   : > { %v773_v18 = vmax.f32 %v701_v11, 0.0  ;;  %v712_v19 = vadd.f32 %v2646_v3, %v591_v12  ;;  %v782_v21 = vmax.f32 %v710_v14, 0.0  ;;  %v2835_v25 = vrot.slane %v2602_v39, %v511_v5  ;;  %v382_v8 = vld [vmem:[%s2586_s24 + $0x7c] sm:$0xff] }
  0x3d   : > { %2195 = vmatpush3.bf16.msra.mxu0 %v2395_v33  ;;  %v819_v20 = vpack.c.bf16 %v783_v13, %v774_v62  ;;  %v775_v23 = vmax.f32 %v703_v15, 0.0  ;;  %v821_v29 = vpack.c.bf16 %v785_v17, %v776_v16  ;;  %v368_v33 = vld [vmem:[%s2586_s24 + $0x18] sm:$0xff]  ;;  %v2843_v34 = vrot.slane %v2610_v47, %v511_v5  ;;  %v378_v12 = vld [vmem:[%s2586_s24 + $0x60] sm:$0xff] }
  0x3e   : > { %2235 = vmatpush3.bf16.msra.mxu1 %v2396_v46  ;;  %2196 = vmatprep.subr.bf16.mxu0 %v2397_v59  ;;  %v784_v3 = vmax.f32 %v712_v19, 0.0  ;;  %v2848_v35 = vrot.slane %v2610_v47, %v499_v41  ;;  %v818_v36 = vpack.c.bf16 %v782_v21, %v773_v18  ;;  %v409_v39 = vunpack.c.l.bf16 %v367_v30  ;;  %v2854_v46 = vld [vmem:[%s3002_s3 + $0x200] sm:$0xff]   ;;  %v377_v59 = vld [vmem:[%s2586_s24 + $0x58] sm:$0xff] }
  0x3f   : > { %2236 = vmatprep.subr.bf16.mxu1 %v2398_v4  ;;  %1459 = vmatprep.mubr.bf16.mxu0 %v819_v20  ;;  %v418_v40 = vunpack.c.l.bf16 %v372_v32  ;;  %v419_v44 = vunpack.c.h.bf16 %v372_v32  ;;  %v411_v45 = vunpack.c.l.bf16 %v368_v33  ;;  %v412_v5 = vunpack.c.h.bf16 %v368_v33  ;;  %v2406_v20 = vld [vmem:[%s3002_s3 + $0x208] sm:$0xff]   ;;  %v2891_v33 = vld [vmem:[%s2586_s24 + $0xa0] sm:$0xff] }
  0x40   : > { %1524 = vmatprep.mubr.bf16.mxu1 %v821_v29  ;;  %v820_v43 = vpack.c.bf16 %v784_v3, %v775_v23  ;;  %1460 = vmatmul.mubr.bf16.gmra.mrb[12].mxu0 %v818_v36  ;;  %v530_v41 = vmul.f32 %v2671_v28, %v409_v39  ;;  %v531_v48 = vmul.f32 %v2720_v22, %v410_v38  ;;  %v420_v52 = vunpack.c.l.bf16 %v373_v42 }
  0x41   : > { %2197 = vmatpush3.bf16.msra.mxu0 %v2399_v57  ;;  %v539_v49 = vmul.f32 %v2671_v28, %v418_v40  ;;  %v540_v53 = vmul.f32 %v2720_v22, %v419_v44  ;;  %v421_v54 = vunpack.c.h.bf16 %v373_v42  ;;  %v532_v55 = vmul.f32 %v2786_v37, %v411_v45 }
  0x42   : > { %2237 = vmatpush3.bf16.msra.mxu1 %v2400_v51  ;;  %2198 = vmatprep.subr.bf16.mxu0 %v2401_v58  ;;  %v533_v56 = vmul.f32 %v2835_v25, %v412_v5  ;;  %v652_v60 = vadd.f32 %v2775_v27, %v531_v48  ;;  %v541_v61 = vmul.f32 %v2786_v37, %v420_v52  ;;  %v428_v11 = vunpack.c.h.bf16 %v377_v59  ;;  %v383_v51 = vld [vmem:[%s2586_s24 + $0x84] sm:$0xff]  ;;  %v2407_v52 = vld [vmem:[%s3002_s3 + $0x210] sm:$0xff]  }
  0x43   : > { %2238 = vmatprep.subr.bf16.mxu1 %v2402_v2  ;;  %1525 = vmatmul.mubr.bf16.gmra.mrb[12].mxu1 %v820_v43  ;;  %v651_v0 = vadd.f32 %v2848_v35, %v530_v41  ;;  %v660_v1 = vadd.f32 %v2848_v35, %v539_v49  ;;  %v661_v4 = vadd.f32 %v2775_v27, %v540_v53  ;;  %v430_v19 = vunpack.c.h.bf16 %v378_v12  ;;  %v392_v5 = vld [vmem:[%s2586_s24 + $0xc4] sm:$0xff] }
  0x44   : > { %v542_v50 = vmul.f32 %v2835_v25, %v421_v54  ;;  %v654_v6 = vadd.f32 %v2843_v34, %v533_v56  ;;  %v2873_v7 = vrot.slane %v2610_v47, %v507_v31  ;;  %v724_v57 = vmax.f32 %v652_v60, 0.0  ;;  %v388_v60 = vld [vmem:[%s2586_s24 + $0xa8] sm:$0xff] }
  0x45   : > { %2199 = vmatpush3.bf16.msra.mxu0 %v2403_v63  ;;  %v723_v9 = vmax.f32 %v651_v0, 0.0  ;;  %v732_v10 = vmax.f32 %v660_v1, 0.0  ;;  %v733_v62 = vmax.f32 %v661_v4, 0.0  ;;  %v437_v31 = vunpack.c.h.bf16 %v382_v8 }
  0x46   : > { %2239 = vmatpush3.bf16.msra.mxu1 %v2404_v24  ;;  %2276 = vmatprep.subr.bf16.mxu0 %v2854_v46  ;;  %v663_v13 = vadd.f32 %v2843_v34, %v542_v50  ;;  %v726_v14 = vmax.f32 %v654_v6, 0.0  ;;  %v653_v15 = vadd.f32 %v2873_v7, %v532_v55  ;;  %v662_v47 = vadd.f32 %v2873_v7, %v541_v61  ;;  %v393_v50 = vld [vmem:[%s2586_s24 + $0xcc] sm:$0xff] }
  0x47   : > { %2300 = vmatprep.subr.bf16.mxu1 %v2854_v46  ;;  %v795_v58 = vpack.c.bf16 %v732_v10, %v723_v9  ;;  %v549_v2 = vmul.f32 %v2720_v22, %v428_v11  ;;  %v796_v16 = vpack.c.bf16 %v733_v62, %v724_v57  ;;  %v558_v21 = vmul.f32 %v2720_v22, %v437_v31 }
  0x48   : > { %v735_v17 = vmax.f32 %v663_v13, 0.0  ;;  %v725_v18 = vmax.f32 %v653_v15, 0.0  ;;  %v734_v63 = vmax.f32 %v662_v47, 0.0  ;;  %v439_v24 = vunpack.c.h.bf16 %v383_v51  ;;  %v2408_v13 = vld [vmem:[%s3002_s3 + $0x218] sm:$0xff]  }
  0x49   : > { %v670_v23 = vadd.f32 %v2775_v27, %v549_v2  ;;  %1565 = vmatprep.mubr.bf16.mxu0 %v796_v16  ;;  %v551_v3 = vmul.f32 %v2835_v25, %v430_v19  ;;  %v427_v30 = vunpack.c.l.bf16 %v377_v59  ;;  %v436_v32 = vunpack.c.l.bf16 %v382_v8 }
  0x4a   : > { %v798_v29 = vpack.c.bf16 %v735_v17, %v726_v14  ;;  %1566 = vmatmul.mubr.bf16.vlgmr.msra.gmra.mrb[16].mxu0 %v795_v58  ;;  %v797_v36 = vpack.c.bf16 %v734_v63, %v725_v18  ;;  %v679_v39 = vadd.f32 %v2775_v27, %v558_v21  ;;  %v560_v40 = vmul.f32 %v2835_v25, %v439_v24  ;;  %v397_v63 = vld [vmem:[%s2586_s24 + $0xe8] sm:$0xff] }
  0x4b   : > { %v742_v38 = vmax.f32 %v670_v23, 0.0  ;;  %2277 = vmatpush3.bf16.msra.mxu0 %v2854_v46  ;;  %v672_v42 = vadd.f32 %v2843_v34, %v551_v3  ;;  %v548_v43 = vmul.f32 %v2671_v28, %v427_v30  ;;  %v557_v44 = vmul.f32 %v2671_v28, %v436_v32 }
  0x4c   : > { %1630 = vmatprep.mubr.bf16.mxu1 %v798_v29  ;;  %v429_v45 = vunpack.c.l.bf16 %v378_v12  ;;  %2278 = vmatprep.subr.bf16.mxu0 %v2406_v20  ;;  %v751_v41 = vmax.f32 %v679_v39, 0.0  ;;  %v681_v48 = vadd.f32 %v2843_v34, %v560_v40  ;;  %v438_v49 = vunpack.c.l.bf16 %v383_v51  ;;  %v398_v39 = vld [vmem:[%s2586_s24 + $0xf0] sm:$0xff] }
  0x4d   : > { %1631 = vmatmul.mubr.bf16.vlgmr.msra.gmra.mrb[16].mxu1 %v797_v36  ;;  %v446_v53 = vunpack.c.h.bf16 %v2891_v33  ;;  %v744_v54 = vmax.f32 %v672_v42, 0.0  ;;  %v669_v55 = vadd.f32 %v2848_v35, %v548_v43  ;;  %v678_v56 = vadd.f32 %v2848_v35, %v557_v44  ;;  %v402_v36 = vld [vmem:[%s2586_s24 + $0x10c] sm:$0xff] }
  0x4e   : > { %2308 = vmatpush3.bf16.msra.mxu1 %v2854_v46  ;;  %v550_v59 = vmul.f32 %v2786_v37, %v429_v45  ;;  %v805_v61 = vpack.c.bf16 %v751_v41, %v742_v38  ;;  %v753_v0 = vmax.f32 %v681_v48, 0.0  ;;  %v559_v1 = vmul.f32 %v2786_v37, %v438_v49  ;;  %v403_v48 = vld [vmem:[%s2586_s24 + $0x114] sm:$0xff] }
  0x4f   : > { %2301 = vmatprep.subr.bf16.mxu1 %v2406_v20  ;;  %v455_v4 = vunpack.c.h.bf16 %v392_v5  ;;  %2279 = vmatpush3.bf16.msra.mxu0 %v2406_v20  ;;  %v741_v6 = vmax.f32 %v669_v55, 0.0  ;;  %v750_v8 = vmax.f32 %v678_v56, 0.0  ;;  %v567_v57 = vmul.f32 %v2720_v22, %v446_v53 }
  0x50   : > { %v671_v46 = vadd.f32 %v2873_v7, %v550_v59  ;;  %1573 = vmatprep.mubr.bf16.mxu0 %v805_v61  ;;  %v807_v9 = vpack.c.bf16 %v753_v0, %v744_v54  ;;  %v680_v10 = vadd.f32 %v2873_v7, %v559_v1  ;;  %2280 = vmatprep.subr.bf16.mxu0 %v2407_v52  ;;  %v448_v12 = vunpack.c.h.bf16 %v388_v60  ;;  %v2410_v61 = vld [vmem:[%s3002_s3 + $0x228] sm:$0xff]  }
  0x51   : > { %v576_v11 = vmul.f32 %v2720_v22, %v455_v4  ;;  %v804_v51 = vpack.c.bf16 %v750_v8, %v741_v6  ;;  %v688_v14 = vadd.f32 %v2775_v27, %v567_v57  ;;  %v457_v15 = vunpack.c.h.bf16 %v393_v50 }
  0x52   : > { %2309 = vmatpush3.bf16.msra.mxu1 %v2406_v20  ;;  %v743_v62 = vmax.f32 %v671_v46, 0.0  ;;  %1638 = vmatprep.mubr.bf16.mxu1 %v807_v9  ;;  %v752_v58 = vmax.f32 %v680_v10, 0.0  ;;  %v569_v31 = vmul.f32 %v2835_v25, %v448_v12  ;;  %v445_v2 = vunpack.c.l.bf16 %v2891_v33  ;;  %v2409_v33 = vld [vmem:[%s3002_s3 + $0x220] sm:$0xff]  }
  0x53   : > { %2302 = vmatprep.subr.bf16.mxu1 %v2407_v52  ;;  %v697_v47 = vadd.f32 %v2775_v27, %v576_v11  ;;  %1574 = vmatmul.mubr.bf16.gmra.mrb[20].mxu0 %v804_v51  ;;  %v760_v16 = vmax.f32 %v688_v14, 0.0  ;;  %v578_v17 = vmul.f32 %v2835_v25, %v457_v15  ;;  %v454_v18 = vunpack.c.l.bf16 %v392_v5  ;;  %v369_v51 = vld [vmem:[%s2586_s24 + $0x20] ss:$36 sps:$4 sm:$0xff]   ;;  %v2411_v15 = vld [vmem:[%s3002_s3 + $0x230] sm:$0xff]  }
  0x54   : > { %v447_v19 = vunpack.c.l.bf16 %v388_v60  ;;  %v806_v20 = vpack.c.bf16 %v752_v58, %v743_v62  ;;  %2281 = vmatpush3.bf16.msra.mxu0 %v2407_v52  ;;  %v690_v23 = vadd.f32 %v2843_v34, %v569_v31  ;;  %v566_v24 = vmul.f32 %v2671_v28, %v445_v2  ;;  %v1989_v31 = vld [vmem:[%s3000_s1 + $0x8] ss:$0 sm:$0xff] }
  0x55   : > { %v769_v21 = vmax.f32 %v697_v47, 0.0  ;;  %2282 = vmatprep.subr.bf16.mxu0 %v2408_v13  ;;  %v699_v29 = vadd.f32 %v2843_v34, %v578_v17  ;;  %v575_v3 = vmul.f32 %v2671_v28, %v454_v18  ;;  %v456_v30 = vunpack.c.l.bf16 %v393_v50  ;;  %v389_v18 = vld [vmem:[%s2586_s24 + $0xb0] ss:$36 sps:$4 sm:$0xff]  }
  0x56   : > { %2310 = vmatpush3.bf16.msra.mxu1 %v2407_v52  ;;  %v568_v32 = vmul.f32 %v2786_v37, %v447_v19  ;;  %v762_v40 = vmax.f32 %v690_v23, 0.0  ;;  %v687_v42 = vadd.f32 %v2848_v35, %v566_v24  ;;  %v464_v43 = vunpack.c.h.bf16 %v397_v63 }
  0x57   : > { %1639 = vmatmul.mubr.bf16.gmra.mrb[20].mxu1 %v806_v20  ;;  %2303 = vmatprep.subr.bf16.mxu1 %v2408_v13  ;;  %v814_v38 = vpack.c.bf16 %v769_v21, %v760_v16  ;;  %v771_v44 = vmax.f32 %v699_v29, 0.0  ;;  %v696_v45 = vadd.f32 %v2848_v35, %v575_v3  ;;  %v577_v5 = vmul.f32 %v2786_v37, %v456_v30  ;;  %v1990_v21 = vld [vmem:[%s3001_s2 + $0x8] ss:$0 sm:$0xff] }
  0x58   : > { %v689_v41 = vadd.f32 %v2873_v7, %v568_v32  ;;  %2283 = vmatpush3.bf16.msra.mxu0 %v2408_v13  ;;  %v759_v49 = vmax.f32 %v687_v42, 0.0  ;;  %v473_v52 = vunpack.c.h.bf16 %v402_v36  ;;  %v585_v53 = vmul.f32 %v2720_v22, %v464_v43  ;;  %v379_v3 = vld [vmem:[%s2586_s24 + $0x68] ss:$36 sps:$4 sm:$0xff]  }
  0x59   : > { %1581 = vmatprep.mubr.bf16.mxu0 %v814_v38  ;;  %v466_v54 = vunpack.c.h.bf16 %v398_v39  ;;  %v816_v55 = vpack.c.bf16 %v771_v44, %v762_v40  ;;  %v768_v56 = vmax.f32 %v696_v45, 0.0  ;;  %v698_v59 = vadd.f32 %v2873_v7, %v577_v5  ;;  %2284 = vmatprep.subr.bf16.mxu0 %v2409_v33 }
  0x5a   : > { %2311 = vmatpush3.bf16.msra.mxu1 %v2408_v13  ;;  %v761_v60 = vmax.f32 %v689_v41, 0.0  ;;  %v594_v0 = vmul.f32 %v2720_v22, %v473_v52  ;;  %v706_v1 = vadd.f32 %v2775_v27, %v585_v53  ;;  %v475_v4 = vunpack.c.h.bf16 %v403_v48 }
  0x5b   : > { %2304 = vmatprep.subr.bf16.mxu1 %v2409_v33  ;;  %v587_v50 = vmul.f32 %v2835_v25, %v466_v54  ;;  %1646 = vmatprep.mubr.bf16.mxu1 %v816_v55  ;;  %v813_v6 = vpack.c.bf16 %v768_v56, %v759_v49  ;;  %v770_v8 = vmax.f32 %v698_v59, 0.0  ;;  %v463_v46 = vunpack.c.l.bf16 %v397_v63 }
  0x5c   : > { %v472_v57 = vunpack.c.l.bf16 %v402_v36  ;;  %2285 = vmatpush3.bf16.msra.mxu0 %v2409_v33  ;;  %v715_v9 = vadd.f32 %v2775_v27, %v594_v0  ;;  %v778_v10 = vmax.f32 %v706_v1, 0.0  ;;  %v596_v11 = vmul.f32 %v2835_v25, %v475_v4 }
  0x5d   : > { %v708_v12 = vadd.f32 %v2843_v34, %v587_v50  ;;  %1582 = vmatmul.mubr.bf16.gmra.mrb[24].mxu0 %v813_v6  ;;  %v815_v22 = vpack.c.bf16 %v770_v8, %v761_v60  ;;  %v584_v62 = vmul.f32 %v2671_v28, %v463_v46  ;;  %v465_v14 = vunpack.c.l.bf16 %v398_v39  ;;  %2286 = vmatprep.subr.bf16.mxu0 %v2410_v61  ;;  %v399_v39 = vld [vmem:[%s2586_s24 + $0xf8] ss:$36 sps:$4 sm:$0xff]   ;;  %s1987_s24 = sshll.u32 %s3010_s6, 2  ;;  %s1988_s6 = sshll.u32 %s3012_s18, 3 }
  0x5e   : > { %2312 = vmatpush3.bf16.msra.mxu1 %v2409_v33  ;;  %v593_v13 = vmul.f32 %v2671_v28, %v472_v57  ;;  %v787_v27 = vmax.f32 %v715_v9, 0.0  ;;  %v717_v25 = vadd.f32 %v2843_v34, %v596_v11  ;;  %v474_v47 = vunpack.c.l.bf16 %v403_v48  ;;  %s355_s23 = scalar_lea.vmem %s3003_s4, %s1987_s24  ;;  %s363_s27 = scalar_lea.vmem %s3004_s5, %s1988_s6 }
  0x5f   : > { %2305 = vmatprep.subr.bf16.mxu1 %v2410_v61  ;;  %v780_v58 = vmax.f32 %v708_v12, 0.0  ;;  %1647 = vmatmul.mubr.bf16.gmra.mrb[24].mxu1 %v815_v22  ;;  %v705_v2 = vadd.f32 %v2848_v35, %v584_v62  ;;  %v586_v16 = vmul.f32 %v2786_v37, %v465_v14  ;;  %v413_v17 = vunpack.c.l.bf16 %v369_v51 }
  0x60   : > { %v714_v28 = vadd.f32 %v2848_v35, %v593_v13  ;;  %2287 = vmatpush3.bf16.msra.mxu0 %v2410_v61  ;;  %v823_v19 = vpack.c.bf16 %v787_v27, %v778_v10  ;;  %v789_v63 = vmax.f32 %v717_v25, 0.0  ;;  %v595_v34 = vmul.f32 %v2786_v37, %v474_v47  ;;  %v2412_v37 = vld [vmem:[%s3002_s3 + $0x238] sm:$0xff]  }
  0x61   : > { %v422_v20 = vunpack.c.h.bf16 %v369_v51  ;;  %v777_v23 = vmax.f32 %v705_v2, 0.0  ;;  %v707_v35 = vadd.f32 %v2873_v7, %v586_v16  ;;  %2288 = vmatprep.subr.bf16.mxu0 %v2411_v15  ;;  %v534_v29 = vmul.f32 %v1989_v31, %v413_v17 }
  0x62   : > { %2313 = vmatpush3.bf16.msra.mxu1 %v2410_v61  ;;  %v786_v24 = vmax.f32 %v714_v28, 0.0  ;;  %1589 = vmatprep.mubr.bf16.mxu0 %v823_v19  ;;  %v825_v30 = vpack.c.bf16 %v789_v63, %v780_v58  ;;  %v716_v32 = vadd.f32 %v2873_v7, %v595_v34  ;;  %v449_v36 = vunpack.c.l.bf16 %v389_v18 }
  0x63   : > { %2306 = vmatprep.subr.bf16.mxu1 %v2411_v15  ;;  %v543_v33 = vmul.f32 %v1989_v31, %v422_v20  ;;  %v779_v40 = vmax.f32 %v707_v35, 0.0  ;;  %v655_v42 = vadd.f32 %v1990_v21, %v534_v29  ;;  %v458_v43 = vunpack.c.h.bf16 %v389_v18 }
  0x64   : > { %v822_v38 = vpack.c.bf16 %v786_v24, %v777_v23  ;;  %1654 = vmatprep.mubr.bf16.mxu1 %v825_v30  ;;  %v788_v44 = vmax.f32 %v716_v32, 0.0  ;;  %2289 = vmatpush3.bf16.msra.mxu0 %v2411_v15  ;;  %v570_v5 = vmul.f32 %v1989_v31, %v449_v36  ;;  %v431_v41 = vunpack.c.l.bf16 %v379_v3 }
  0x65   : > { %v664_v45 = vadd.f32 %v1990_v21, %v543_v33  ;;  %v727_v7 = vmax.f32 %v655_v42, 0.0  ;;  %v579_v48 = vmul.f32 %v1989_v31, %v458_v43  ;;  %v440_v49 = vunpack.c.h.bf16 %v379_v3  ;;  %2290 = vmatprep.subr.bf16.mxu0 %v2412_v37 }
  0x66   : > { %1590 = vmatmul.mubr.bf16.gmra.mrb[28].mxu0 %v822_v38  ;;  %2314 = vmatpush3.bf16.msra.mxu1 %v2411_v15  ;;  %v467_v52 = vunpack.c.l.bf16 %v399_v39  ;;  %v824_v53 = vpack.c.bf16 %v788_v44, %v779_v40  ;;  %v691_v55 = vadd.f32 %v1990_v21, %v570_v5  ;;  %v552_v56 = vmul.f32 %v1989_v31, %v431_v41 }
  0x67   : > { %2307 = vmatprep.subr.bf16.mxu1 %v2412_v37  ;;  %v736_v54 = vmax.f32 %v664_v45, 0.0  ;;  %v700_v59 = vadd.f32 %v1990_v21, %v579_v48  ;;  %v561_v60 = vmul.f32 %v1989_v31, %v440_v49  ;;  %v476_v61 = vunpack.c.h.bf16 %v399_v39 }
  0x68   : > { %v588_v0 = vmul.f32 %v1989_v31, %v467_v52  ;;  %1655 = vmatmul.mubr.bf16.gmra.mrb[28].mxu1 %v824_v53  ;;  %2291 = vmatpush3.bf16.msra.mxu0 %v2412_v37  ;;  %v763_v4 = vmax.f32 %v691_v55, 0.0  ;;  %v673_v50 = vadd.f32 %v1990_v21, %v552_v56 }
  0x69   : > { %v799_v1 = vpack.c.bf16 %v736_v54, %v727_v7  ;;  %v772_v6 = vmax.f32 %v700_v59, 0.0  ;;  %v682_v8 = vadd.f32 %v1990_v21, %v561_v60  ;;  %v597_v46 = vmul.f32 %v1989_v31, %v476_v61 }
  0x6a   : > { %2315 = vmatpush3.bf16.msra.mxu1 %v2412_v37  ;;  %v709_v57 = vadd.f32 %v1990_v21, %v588_v0  ;;  %v745_v9 = vmax.f32 %v673_v50, 0.0 }
  0x6b   : > { %2292 = vmatprep.mubr.bf16.mxu0 %v799_v1  ;;  %v817_v10 = vpack.c.bf16 %v772_v6, %v763_v4  ;;  %v754_v11 = vmax.f32 %v682_v8, 0.0  ;;  %v718_v12 = vadd.f32 %v1990_v21, %v597_v46 }
  0x6c   : > { %v781_v51 = vmax.f32 %v709_v57, 0.0 }
  0x6d   : > { %2296 = vmatprep.mubr.bf16.mxu1 %v817_v10  ;;  %v808_v22 = vpack.c.bf16 %v754_v11, %v745_v9  ;;  %v790_v62 = vmax.f32 %v718_v12, 0.0 }
  0x6f   : > { %2293 = vmatmul.mubr.bf16.vlgmr.msra.gmra.mrb[32].mxu0 %v808_v22  ;;  %v826_v13 = vpack.c.bf16 %v790_v62, %v781_v51 }
  0x71   : > { %2297 = vmatmul.mubr.bf16.vlgmr.msra.gmra.mrb[32].mxu1 %v826_v13 }
  0xfb   : > { %v2120_v14 = vpop.f32.mrb[0].mxu0 }
  0xfc   : > { %v2160_v15 = vpop.f32.mrb[0].mxu1  ;;  %v2121_v27 = vpop.f32.mrb[1].mxu0 }
  0xfd   : > { %v2122_v25 = vadd.f32 %v2121_v27, %v2120_v14  ;;  %v2161_v58 = vpop.f32.mrb[1].mxu1  ;;  %v2123_v47 = vpop.f32.mrb[2].mxu0 }
  0xfe   : > { %v2162_v31 = vadd.f32 %v2161_v58, %v2160_v15  ;;  %v2163_v2 = vpop.f32.mrb[2].mxu1  ;;  %v2124_v28 = vpop.f32.mrb[3].mxu0 }
  0xff   : > { %v2125_v16 = vadd.f32 %v2124_v28, %v2123_v47  ;;  %v2164_v17 = vpop.f32.mrb[3].mxu1 }
 0x100   : > { %v1503_v18 = vadd.f32 %v2162_v31, %v2122_v25  ;;  %v2165_v19 = vadd.f32 %v2164_v17, %v2163_v2 }
 0x102   : > { %v1506_v63 = vadd.f32 %v2165_v19, %v2125_v16 }
 0x103   : > { %v2126_v34 = vpop.f32.mrb[4].mxu0 }
 0x104   : > { %v2127_v20 = vpop.f32.mrb[5].mxu0  ;;  %v2166_v24 = vpop.f32.mrb[4].mxu1 }
 0x105   : > { %v2128_v21 = vadd.f32 %v2127_v20, %v2126_v34  ;;  %v2129_v23 = vpop.f32.mrb[6].mxu0  ;;  %v2167_v29 = vpop.f32.mrb[5].mxu1 }
 0x106   : > { %v2130_v35 = vpop.f32.mrb[7].mxu0  ;;  %v2168_v30 = vadd.f32 %v2167_v29, %v2166_v24  ;;  %v2169_v32 = vpop.f32.mrb[6].mxu1 }
 0x107   : > { %v2131_v3 = vadd.f32 %v2130_v35, %v2129_v23  ;;  %v2170_v37 = vpop.f32.mrb[7].mxu1 }
 0x108   : > { %v1511_v33 = vadd.f32 %v2168_v30, %v2128_v21  ;;  %v2171_v36 = vadd.f32 %v2170_v37, %v2169_v32 }
 0x10a   : > { %v1514_v39 = vadd.f32 %v2171_v36, %v2131_v3 }
 0x10b   : > { %v2132_v38 = vpop.f32.mrb[8].mxu0 }
 0x10c   : > { %v2172_v40 = vpop.f32.mrb[8].mxu1  ;;  %v2133_v42 = vpop.f32.mrb[9].mxu0 }
 0x10d   : > { %v2134_v43 = vadd.f32 %v2133_v42, %v2132_v38  ;;  %v2173_v44 = vpop.f32.mrb[9].mxu1  ;;  %v2135_v45 = vpop.f32.mrb[10].mxu0 }
 0x10e   : > { %v2174_v5 = vadd.f32 %v2173_v44, %v2172_v40  ;;  %v2175_v41 = vpop.f32.mrb[10].mxu1  ;;  %v2136_v7 = vpop.f32.mrb[11].mxu0 }
 0x10f   : > { %v2137_v48 = vadd.f32 %v2136_v7, %v2135_v45  ;;  %v2176_v49 = vpop.f32.mrb[11].mxu1 }
 0x110   : > { %v1519_v52 = vadd.f32 %v2174_v5, %v2134_v43  ;;  %v2177_v53 = vadd.f32 %v2176_v49, %v2175_v41 }
 0x112   : > { %v1522_v54 = vadd.f32 %v2177_v53, %v2137_v48 }
 0x113   : > { %v2138_v55 = vpop.f32.mrb[12].mxu0 }
 0x114   : > { %v2139_v59 = vpop.f32.mrb[13].mxu0 }
 0x115   : > { %v2140_v60 = vadd.f32 %v2139_v59, %v2138_v55  ;;  %v2141_v0 = vpop.f32.mrb[14].mxu0 }
 0x116   : > { %v2178_v56 = vpop.f32.mrb[12].mxu1  ;;  %v2142_v50 = vpop.f32.mrb[15].mxu0 }
 0x117   : > { %v2179_v61 = vpop.f32.mrb[13].mxu1  ;;  %v2143_v6 = vadd.f32 %v2142_v50, %v2141_v0 }
 0x118   : > { %v2180_v1 = vadd.f32 %v2179_v61, %v2178_v56  ;;  %v2181_v4 = vpop.f32.mrb[14].mxu1 }
 0x119   : > { %v2182_v8 = vpop.f32.mrb[15].mxu1 }
 0x11a   : > { %v1527_v46 = vadd.f32 %v2180_v1, %v2140_v60  ;;  %v2183_v57 = vadd.f32 %v2182_v8, %v2181_v4 }
 0x11c   : > { %v1530_v9 = vadd.f32 %v2183_v57, %v2143_v6 }
 0x11d   : > { %v2200_v10 = vpop.f32.mrb[16].mxu0 }
 0x11e   : > { %v2201_v11 = vpop.f32.mrb[17].mxu0 }
 0x11f   : > { %v2202_v12 = vadd.f32 %v2201_v11, %v2200_v10  ;;  %v2203_v51 = vpop.f32.mrb[18].mxu0 }
 0x120   : > { %v2240_v22 = vpop.f32.mrb[16].mxu1  ;;  %v2204_v62 = vpop.f32.mrb[19].mxu0 }
 0x121   : > { %v2241_v13 = vpop.f32.mrb[17].mxu1  ;;  %v1568_v14 = vadd.f32 %v2202_v12, %v1503_v18  ;;  %v2205_v15 = vadd.f32 %v2204_v62, %v2203_v51 }
 0x122   : > { %v2242_v27 = vadd.f32 %v2241_v13, %v2240_v22  ;;  %v2243_v25 = vpop.f32.mrb[18].mxu1 }
 0x123   : > { %v2244_v58 = vpop.f32.mrb[19].mxu1  ;;  %v1571_v47 = vadd.f32 %v2205_v15, %v1506_v63 }
 0x124   : > { %v2245_v31 = vadd.f32 %v2244_v58, %v2243_v25  ;;  %v1633_v2 = vadd.f32 %v2242_v27, %v1568_v14 }
 0x126   : > { %v2976_v28 = vadd.f32 %v2245_v31, %v1571_v47  ;;  %v2206_v16 = vpop.f32.mrb[20].mxu0 }
 0x127   : > { %v2207_v17 = vpop.f32.mrb[21].mxu0 }
 0x128   : > { %v2208_v19 = vadd.f32 %v2207_v17, %v2206_v16  ;;  %v2209_v34 = vpop.f32.mrb[22].mxu0 }
 0x129   : > { %v2210_v21 = vpop.f32.mrb[23].mxu0 }
 0x12a   : > { %v2246_v20 = vpop.f32.mrb[20].mxu1  ;;  %v1576_v23 = vadd.f32 %v2208_v19, %v1511_v33  ;;  %v2211_v24 = vadd.f32 %v2210_v21, %v2209_v34 }
 0x12b   : > { %v2247_v35 = vpop.f32.mrb[21].mxu1 }
 0x12c   : > { %v2248_v29 = vadd.f32 %v2247_v35, %v2246_v20  ;;  %v2249_v18 = vpop.f32.mrb[22].mxu1  ;;  %v1579_v3 = vadd.f32 %v2211_v24, %v1514_v39 }
 0x12d   : > { %v2250_v30 = vpop.f32.mrb[23].mxu1 }
 0x12e   : > { %v2251_v32 = vadd.f32 %v2250_v30, %v2249_v18  ;;  %v1641_v37 = vadd.f32 %v2248_v29, %v1576_v23 }
 0x130   : > { %v1644_v63 = vadd.f32 %v2251_v32, %v1579_v3  ;;  %v2212_v36 = vpop.f32.mrb[24].mxu0 }
 0x131   : > { %v2213_v38 = vpop.f32.mrb[25].mxu0 }
 0x132   : > { %v2214_v40 = vadd.f32 %v2213_v38, %v2212_v36  ;;  %v2215_v42 = vpop.f32.mrb[26].mxu0  ;;  %v2252_v43 = vpop.f32.mrb[24].mxu1 }
 0x133   : > { %v2216_v44 = vpop.f32.mrb[27].mxu0  ;;  %v2253_v45 = vpop.f32.mrb[25].mxu1 }
 0x134   : > { %v1584_v5 = vadd.f32 %v2214_v40, %v1519_v52  ;;  %v2217_v41 = vadd.f32 %v2216_v44, %v2215_v42  ;;  %v2254_v7 = vadd.f32 %v2253_v45, %v2252_v43  ;;  %v2255_v33 = vpop.f32.mrb[26].mxu1 }
 0x135   : > { %v2256_v48 = vpop.f32.mrb[27].mxu1 }
 0x136   : > { %v1587_v49 = vadd.f32 %v2217_v41, %v1522_v54  ;;  %v2257_v53 = vadd.f32 %v2256_v48, %v2255_v33  ;;  %v1649_v55 = vadd.f32 %v2254_v7, %v1584_v5 }
 0x138   : > { %v1652_v56 = vadd.f32 %v2257_v53, %v1587_v49 }
 0x139   : > { %v2218_v39 = vpop.f32.mrb[28].mxu0 }
 0x13a   : > { %v2219_v59 = vpop.f32.mrb[29].mxu0 }
 0x13b   : > { %v2220_v60 = vadd.f32 %v2219_v59, %v2218_v39  ;;  %v2221_v61 = vpop.f32.mrb[30].mxu0  ;;  %v2258_v0 = vpop.f32.mrb[28].mxu1 }
 0x13c   : > { %v2222_v1 = vpop.f32.mrb[31].mxu0  ;;  %v2259_v6 = vpop.f32.mrb[29].mxu1 }
 0x13d   : > { %v1592_v4 = vadd.f32 %v2220_v60, %v1527_v46  ;;  %v2223_v50 = vadd.f32 %v2222_v1, %v2221_v61  ;;  %v2260_v8 = vadd.f32 %v2259_v6, %v2258_v0  ;;  %v2261_v52 = vpop.f32.mrb[30].mxu1 }
 0x13e   : > { %v2262_v10 = vpop.f32.mrb[31].mxu1 }
 0x13f   : > { %v1595_v57 = vadd.f32 %v2223_v50, %v1530_v9  ;;  %v2263_v11 = vadd.f32 %v2262_v10, %v2261_v52  ;;  %v1657_v12 = vadd.f32 %v2260_v8, %v1592_v4 }
 0x141   : > { %v1660_v54 = vadd.f32 %v2263_v11, %v1595_v57 }
 0x142   : > { %v2294_v51 = vpop.f32.mrb[32].mxu0 }
 0x143   : > { %v1706_v22 = vadd.f32 %v2294_v51, %v1641_v37  ;;  %v1697_v62 = vpop.f32.mrb[33].mxu0 }
 0x144   : > { %v2298_v13 = vpop.f32.mrb[32].mxu1  ;;  %v1698_v14 = vadd.f32 %v1697_v62, %v1633_v2  ;;  %v2295_v15 = vpop.f32.mrb[34].mxu0 }
 0x145   : > { %v1722_v27 = vadd.f32 %v2298_v13, %v1657_v12  ;;  %v1713_v25 = vpop.f32.mrb[33].mxu1  ;;  %v1709_v58 = vadd.f32 %v2295_v15, %v1644_v63  ;;  %v1700_v46 = vpop.f32.mrb[35].mxu0  ;;  %v1783_v35 = vmul.f32 %v1706_v22, %v1706_v22 }
 0x146   : > { %v1714_v47 = vadd.f32 %v1713_v25, %v1649_v55  ;;  %v2299_v9 = vpop.f32.mrb[34].mxu1  ;;  %v1701_v31 = vadd.f32 %v1700_v46, %v2976_v28  ;;  %v1781_v34 = vmul.f32 %v1698_v14, %v1698_v14 }
 0x147   : > { %v2089_v16 = vpack.c.bf16 %v1709_v58, %v1706_v22  ;;  %v1725_v17 = vadd.f32 %v2299_v9, %v1660_v54  ;;  %v1716_v19 = vpop.f32.mrb[35].mxu1  ;;  %v1784_v30 = vmul.f32 %v1709_v58, %v1709_v58  ;;  %v1787_v43 = vmul.f32 %v1722_v27, %v1722_v27 }
 0x148   : > { %v2084_v20 = vpack.c.bf16 %v1701_v31, %v1698_v14  ;;  %v1768_v21 = vadd.f32 %v1701_v31, %v1698_v14  ;;  %v1782_v2 = vmul.f32 %v1701_v31, %v1701_v31  ;;  %v1717_v24 = vadd.f32 %v1716_v19, %v1652_v56 }
 0x149   : > { %2101 = vst [vmem:[%s355_s23 + $0x8] sm:$0xff] %v2089_v16   ;;  %v2099_v23 = vpack.c.bf16 %v1725_v17, %v1722_v27  ;;  %v1785_v28 = vmul.f32 %v1714_v47, %v1714_v47  ;;  %v1788_v5 = vmul.f32 %v1725_v17, %v1725_v17 }
 0x14a   : > { %2085 = vst [vmem:[%s355_s23] sm:$0xff] %v2084_v20   ;;  %v1769_v29 = vadd.f32 %v1768_v21, %v1706_v22  ;;  %v1789_v18 = vadd.f32 %v1782_v2, %v1781_v34  ;;  %v2094_v3 = vpack.c.bf16 %v1717_v24, %v1714_v47  ;;  %v1786_v40 = vmul.f32 %v1717_v24, %v1717_v24 }
 0x14b   : > { %2103 = vst [vmem:[%s355_s23 + $0x18] sm:$0xff] %v2099_v23  }
 0x14c   : > { %v1790_v32 = vadd.f32 %v1789_v18, %v1783_v35  ;;  %v1770_v37 = vadd.f32 %v1769_v29, %v1709_v58  ;;  %2102 = vst [vmem:[%s355_s23 + $0x10] sm:$0xff] %v2094_v3  }
 0x14e   : > { %v1771_v63 = vadd.f32 %v1770_v37, %v1714_v47  ;;  %v1791_v36 = vadd.f32 %v1790_v32, %v1784_v30 }
 0x150   : > { %v1772_v38 = vadd.f32 %v1771_v63, %v1717_v24  ;;  %v1792_v42 = vadd.f32 %v1791_v36, %v1785_v28 }
 0x152   : > { %v1773_v44 = vadd.f32 %v1772_v38, %v1722_v27  ;;  %v1793_v45 = vadd.f32 %v1792_v42, %v1786_v40 }
 0x154   : > { %v1774_v41 = vadd.f32 %v1773_v44, %v1725_v17  ;;  %v1794_v7 = vadd.f32 %v1793_v45, %v1787_v43 }
 0x156   : > { %v1775_v33 = vrot.slane %v1774_v41, 4  ;;  %v1795_v48 = vadd.f32 %v1794_v7, %v1788_v5 }
 0x158   : > { %v1776_v49 = vadd.f32 %v1775_v33, %v1774_v41  ;;  %v1796_v53 = vrot.slane %v1795_v48, 4 }
 0x15a   : > { %v1777_v55 = vrot.slane %v1776_v49, 2  ;;  %v1797_v39 = vadd.f32 %v1796_v53, %v1795_v48 }
 0x15c   : > { %v1778_v56 = vadd.f32 %v1777_v55, %v1776_v49  ;;  %v1798_v59 = vrot.slane %v1797_v39, 2 }
 0x15e   : > { %v1799_v60 = vadd.f32 %v1798_v59, %v1797_v39  ;;  %v1779_v61 = vrot.slane %v1778_v56, 1 }
 0x160   : > { %v1800_v0 = vrot.slane %v1799_v60, 1  ;;  %v1780_v4 = vadd.f32 %v1779_v61, %v1778_v56 }
 0x162   : > { %v1801_v1 = vadd.f32 %v1800_v0, %v1799_v60 }
 0x164   : > { %v1806_v50 = vsel %vm1805_vm0, %v1801_v1, 0.0 }
 0x165   : > { %v1807_v6 = vsel %vm1804_vm1, %v1780_v4, %v1806_v50 }
 0x166   : > { %1808 = vst [vmem:[%s363_s27] sm:$0xff] %v1807_v6 }
 0x167 PF: > { %s16_s20 = sadd.s32 1, %s2435_s20   ;;  %s3005_s18 = smov %s2431_s19 }
 0x168   : > { %p13_p6 = scmp.ge.s32.totalorder %s16_s20, 4   ;;  %s3006_s19 = smov %s3008_s21 }
 0x16a   :  { %15 = sbr.rel (!%p13_p6) target bundleno = 2 (0x2), region = 87 }

</bundles_post_ra>
